<compile_context>
chip_gen: v7x
topology: tpu7x:2x2x1
jax: 0.10.0
libtpu: 0.0.40
codegen_flags: <defaults>
</compile_context>

<pallas_src>
import jax
import jax.numpy as jnp
from jax.experimental import pallas as pl
from jax.experimental.pallas import tpu as pltpu

INPUT_SIZE = 16       # input_size (feature count of the scaled dataframe)
HIDDEN = 128          # hidden_size
NUM_LAYERS = 2
NUM_CLASSES = 2
OUT_PAD = 128         # pad classifier output to a full lane tile (unmasked vst)


def _lstm_kernel(x_ref, wih0_ref, whh0_ref, b0_ref, w1c_ref, b1_ref,
                 fcw_ref, fcb_ref, out_ref, xg_ref):
    S, TB, F = x_ref.shape
    H = HIDDEN
    mm = wih0_ref.dtype                      # matmul operand dtype (bf16 or f32)

    # ---- Layer-0 input projection for ALL S*TB tokens in one large-M MXU matmul.
    # Time-major, so per-step slabs in xg_ref are contiguous sublane blocks.
    x = x_ref[...].reshape(S * TB, F).astype(mm)
    xg_ref[...] = (jnp.dot(x, wih0_ref[...], preferred_element_type=jnp.float32)
                   + b0_ref[...])

    whh0 = whh0_ref[...]                                     # (H, 4H)
    w1c = w1c_ref[...]                                       # (2H, 4H) = [W_ih_1 ; W_hh_1]
    b1 = jnp.broadcast_to(b1_ref[...], (TB, 4 * H))          # hoisted out of the loop

    def act(gates, c):
        # PyTorch gate order: i, f, g, o ; 128-lane-aligned slices.
        i = jax.nn.sigmoid(gates[:, 0 * H:1 * H])
        f = jax.nn.sigmoid(gates[:, 1 * H:2 * H])
        g = jnp.tanh(gates[:, 2 * H:3 * H])
        o = jax.nn.sigmoid(gates[:, 3 * H:4 * H])
        c_new = f * c + i * g
        h_new = o * jnp.tanh(c_new)
        return h_new, c_new

    def layer0_step(t, h0, c0):
        start = pl.multiple_of(t * TB, 8)                    # TB % 8 == 0 -> aligned slab
        g0 = (xg_ref[pl.ds(start, TB), :]
              + jnp.dot(h0.astype(mm), whh0, preferred_element_type=jnp.float32))
        return act(g0, c0)

    def layer1_step(h0_prev, h1, c1):
        # Single K=256 matmul fills the 256-wide MXU and fuses W_ih_1 / W_hh_1.
        x1 = jnp.concatenate([h0_prev, h1], axis=1).astype(mm)   # (TB, 2H)
        g1 = jnp.dot(x1, w1c, preferred_element_type=jnp.float32) + b1
        return act(g1, c1)

    zeros = jnp.zeros((TB, H), jnp.float32)

    # Peel t=0: h0_{-1} = 0, so the layer-0 recurrent term vanishes.
    h0, c0 = act(xg_ref[pl.ds(0, TB), :], zeros)

    # Wavefront: iteration t runs layer-0 step t and layer-1 step t-1; both only depend
    # on state from the previous iteration, so the two MXU matmuls are independent.
    def body(t, carry):
        h0, c0, h1, c1 = carry
        h1n, c1n = layer1_step(h0, h1, c1)
        h0n, c0n = layer0_step(t, h0, c0)
        return (h0n, c0n, h1n, c1n)

    h0, c0, h1, c1 = jax.lax.fori_loop(1, S, body, (h0, c0, zeros, zeros))

    # Peel the tail: layer-1 consumes the last layer-0 hidden state.
    h1, _ = layer1_step(h0, h1, c1)

    # Dropout(p=0.2) between the LSTM layers is identity in eval mode.

    # fc on the last timestep; weights zero-padded to 128 lanes -> lane-dense (TB,128) store.
    out_ref[...] = (jnp.dot(h1.astype(mm), fcw_ref[...],
                            preferred_element_type=jnp.float32) + fcb_ref[...])


def _pick_tb(b_pad, s):
    """Tile the (padded) batch: single grid step by default; split only for megacore
    when each half keeps MXU M-fill, or when the xg0 scratch would blow the VMEM budget."""
    token_bytes = 4 * HIDDEN * 4              # f32 (4H) gate slab per (batch, time) token
    budget = 16 * 1024 * 1024                 # conservative vs 32 MiB default scoped VMEM
    tb = b_pad
    if tb % 16 == 0 and tb // 2 >= 128:       # 2 TensorCores (v7x) only if M stays >= 128
        tb //= 2
    while tb % 16 == 0 and tb * s * token_bytes > budget:
        tb //= 2
    return tb


def lstm_forward(x, params, *, matmul_dtype=jnp.bfloat16):
    B, S, F = x.shape
    H, NC = HIDDEN, NUM_CLASSES

    # Pad batch to a multiple of 8: sublane-aligned per-step slabs + non-trivial MXU M.
    b_pad = max(8, ((B + 7) // 8) * 8)
    if b_pad != B:
        x = jnp.concatenate([x, jnp.zeros((b_pad - B, S, F), x.dtype)], axis=0)

    # Time-major layout so per-timestep slabs are contiguous.
    x_tm = jnp.transpose(x.astype(jnp.float32), (1, 0, 2))       # (S, B_pad, F)

    tb = _pick_tb(b_pad, S)

    mm = matmul_dtype
    w_ih_0 = params["w_ih_0"].astype(mm)                          # (F, 4H)
    w_hh_0 = params["w_hh_0"].astype(mm)                          # (H, 4H)
    b_0 = params["b_0"].astype(jnp.float32)                       # (1, 4H) = b_ih + b_hh
    # Fused layer-1 weight so the per-step matmul has K = 2H = 256.
    w1_cat = jnp.concatenate([params["w_ih_1"], params["w_hh_1"]], axis=0).astype(mm)
    b_1 = params["b_1"].astype(jnp.float32)                       # (1, 4H)
    fcw = jnp.zeros((H, OUT_PAD), jnp.float32).at[:, :NC].set(params["fc_w"]).astype(mm)
    fcb = jnp.zeros((1, OUT_PAD), jnp.float32).at[:, :NC].set(params["fc_b"])
    weights = [w_ih_0, w_hh_0, b_0, w1_cat, b_1, fcw, fcb]

    def full_spec(a):
        nd = a.ndim
        return pl.BlockSpec(a.shape, lambda b: (0,) * nd)

    out = pl.pallas_call(
        _lstm_kernel,
        out_shape=jax.ShapeDtypeStruct((b_pad, OUT_PAD), jnp.float32),
        grid=(b_pad // tb,),
        in_specs=[pl.BlockSpec((S, tb, F), lambda b: (0, b, 0))]
                 + [full_spec(a) for a in weights],
        out_specs=pl.BlockSpec((tb, OUT_PAD), lambda b: (b, 0)),
        scratch_shapes=[pltpu.VMEM((S * tb, 4 * HIDDEN), jnp.float32)],   # xg0 slab
        compiler_params=pltpu.CompilerParams(
            dimension_semantics=("parallel",),
            vmem_limit_bytes=48 * 1024 * 1024,
        ),
    )(x_tm, *weights)
    return out[:B, :NC]


def make_params(key):
    ks = jax.random.split(key, 8)

    def normal(k, shape, scale=0.1):
        return (scale * jax.random.normal(k, shape)).astype(jnp.float32)

    H, F, NC = HIDDEN, INPUT_SIZE, NUM_CLASSES
    return {
        # LSTM weights pre-transposed to (in_features, 4H); PyTorch gate order i, f, g, o.
        "w_ih_0": normal(ks[0], (F, 4 * H)),
        "w_hh_0": normal(ks[1], (H, 4 * H)),
        "b_0":    normal(ks[2], (1, 4 * H)),      # = b_ih_l0 + b_hh_l0
        "w_ih_1": normal(ks[3], (H, 4 * H)),
        "w_hh_1": normal(ks[4], (H, 4 * H)),
        "b_1":    normal(ks[5], (1, 4 * H)),      # = b_ih_l1 + b_hh_l1
        "fc_w":   normal(ks[6], (H, NC)),
        "fc_b":   normal(ks[7], (1, NC)),
    }


def ref_forward(x, p):
    """Pure-JAX reference replicating PyTorch eval-mode LSTM + fc(last timestep)."""
    B, S, _ = x.shape
    H = HIDDEN
    h_in = x
    for l in range(NUM_LAYERS):
        wih, whh, b = p[f"w_ih_{l}"], p[f"w_hh_{l}"], p[f"b_{l}"]
        h = jnp.zeros((B, H), jnp.float32)
        c = jnp.zeros((B, H), jnp.float32)
        outs = []
        for t in range(S):
            gates = h_in[:, t, :] @ wih + h @ whh + b
            i = jax.nn.sigmoid(gates[:, 0 * H:1 * H])
            f = jax.nn.sigmoid(gates[:, 1 * H:2 * H])
            g = jnp.tanh(gates[:, 2 * H:3 * H])
            o = jax.nn.sigmoid(gates[:, 3 * H:4 * H])
            c = f * c + i * g
            h = o * jnp.tanh(c)
            outs.append(h)
        h_in = jnp.stack(outs, axis=1)   # dropout between layers: identity in eval
    return h_in[:, -1, :] @ p["fc_w"] + p["fc_b"]


if __name__ == "__main__":
    key = jax.random.PRNGKey(0)
    k_x, k_p = jax.random.split(key)
    B, S = 2, 8
    x = jax.random.normal(k_x, (B, S, INPUT_SIZE), dtype=jnp.float32)
    params = make_params(k_p)

    ref = jax.block_until_ready(ref_forward(x, params))

    # f32-matmul path: tight check of kernel structure / semantics.
    out_f32 = jax.block_until_ready(lstm_forward(x, params, matmul_dtype=jnp.float32))
    assert out_f32.shape == (B, NUM_CLASSES), out_f32.shape
    assert jnp.allclose(out_f32, ref, atol=2e-3, rtol=1e-3), (out_f32, ref)

    # Default bf16-operand / f32-accumulate path (perf guidance); the recurrence compounds
    # rounding over S, so check with a looser tolerance.
    out_bf16 = jax.block_until_ready(lstm_forward(x, params))
    assert out_bf16.shape == (B, NUM_CLASSES), out_bf16.shape
    assert jnp.allclose(out_bf16, ref, atol=5e-2, rtol=5e-2), (out_bf16, ref)

    print("KERNEL_OK")
</pallas_src>

<mosaic_0001>
module attributes {stable_mosaic.version = 11 : i64} {
  func.func @_lstm_kernel(%arg0: i32, %arg1: memref<8x8x16xf32, #tpu.memory_space<vmem>>, %arg2: memref<16x512xf32, #tpu.memory_space<vmem>>, %arg3: memref<128x512xf32, #tpu.memory_space<vmem>>, %arg4: memref<1x512xf32, #tpu.memory_space<vmem>>, %arg5: memref<256x512xf32, #tpu.memory_space<vmem>>, %arg6: memref<1x512xf32, #tpu.memory_space<vmem>>, %arg7: memref<128x128xf32, #tpu.memory_space<vmem>>, %arg8: memref<1x128xf32, #tpu.memory_space<vmem>>, %arg9: memref<8x128xf32, #tpu.memory_space<vmem>>, %arg10: memref<64x512xf32, #tpu.memory_space<vmem>>) attributes {dimension_semantics = [#tpu.dimension_semantics<parallel>], iteration_bounds = array<i64: 1>, scalar_prefetch = 0 : i64, scratch_operands = 1 : i64, tpu.core_type = #tpu.core_type<tc>, window_params = [{transform_indices = @transform_0, window_bounds = array<i64: 8, 8, 16>}, {pipeline_mode = #tpu.pipeline_mode<synchronous>, transform_indices = @transform_1, window_bounds = array<i64: 16, 512>}, {pipeline_mode = #tpu.pipeline_mode<synchronous>, transform_indices = @transform_2, window_bounds = array<i64: 128, 512>}, {pipeline_mode = #tpu.pipeline_mode<synchronous>, transform_indices = @transform_3, window_bounds = array<i64: 1, 512>}, {pipeline_mode = #tpu.pipeline_mode<synchronous>, transform_indices = @transform_4, window_bounds = array<i64: 256, 512>}, {pipeline_mode = #tpu.pipeline_mode<synchronous>, transform_indices = @transform_5, window_bounds = array<i64: 1, 512>}, {pipeline_mode = #tpu.pipeline_mode<synchronous>, transform_indices = @transform_6, window_bounds = array<i64: 128, 128>}, {pipeline_mode = #tpu.pipeline_mode<synchronous>, transform_indices = @transform_7, window_bounds = array<i64: 1, 128>}, {transform_indices = @transform_8, window_bounds = array<i64: 8, 128>}]} {
    %c0 = arith.constant 0 : index
    %c0_0 = arith.constant 0 : index
    %c0_1 = arith.constant 0 : index
    %0 = vector.load %arg1[%c0, %c0_0, %c0_1] : memref<8x8x16xf32, #tpu.memory_space<vmem>>, vector<8x8x16xf32>
    %1 = vector.shape_cast %0 : vector<8x8x16xf32> to vector<64x16xf32>
    %c0_2 = arith.constant 0 : index
    %c0_3 = arith.constant 0 : index
    %2 = vector.load %arg2[%c0_2, %c0_3] : memref<16x512xf32, #tpu.memory_space<vmem>>, vector<16x512xf32>
    %cst = arith.constant dense<0.000000e+00> : vector<64x512xf32>
    %3 = tpu.matmul %1, %2, %cst {dimension_numbers = #tpu.dot_dimension_numbers<[1], [0], [0], [1], [0, 0, 1, 1], [], []>} : vector<64x16xf32>, vector<16x512xf32>, vector<64x512xf32> -> vector<64x512xf32>
    %c0_4 = arith.constant 0 : index
    %c0_5 = arith.constant 0 : index
    %4 = vector.load %arg4[%c0_4, %c0_5] : memref<1x512xf32, #tpu.memory_space<vmem>>, vector<1x512xf32>
    %5 = vector.broadcast %4 : vector<1x512xf32> to vector<64x512xf32>
    %6 = arith.addf %3, %5 : vector<64x512xf32>
    %c0_6 = arith.constant 0 : index
    %c0_7 = arith.constant 0 : index
    %7 = vector.load %arg10[%c0_6, %c0_7] : memref<64x512xf32, #tpu.memory_space<vmem>>, vector<64x512xf32>
    tpu.vector_store %arg10[%c0_6, %c0_7], %6 {strides = array<i32>} : memref<64x512xf32, #tpu.memory_space<vmem>>, vector<64x512xf32>,
    %c0_8 = arith.constant 0 : index
    %c0_9 = arith.constant 0 : index
    %8 = vector.load %arg3[%c0_8, %c0_9] : memref<128x512xf32, #tpu.memory_space<vmem>>, vector<128x512xf32>
    %c0_10 = arith.constant 0 : index
    %c0_11 = arith.constant 0 : index
    %9 = vector.load %arg5[%c0_10, %c0_11] : memref<256x512xf32, #tpu.memory_space<vmem>>, vector<256x512xf32>
    %c0_12 = arith.constant 0 : index
    %c0_13 = arith.constant 0 : index
    %10 = vector.load %arg6[%c0_12, %c0_13] : memref<1x512xf32, #tpu.memory_space<vmem>>, vector<1x512xf32>
    %11 = vector.shape_cast %10 : vector<1x512xf32> to vector<1x512xf32>
    %12 = vector.broadcast %11 : vector<1x512xf32> to vector<8x512xf32>
    %cst_14 = arith.constant 0.000000e+00 : f32
    %13 = vector.broadcast %cst_14 : f32 to vector<8x128xf32>
    %c0_15 = arith.constant 0 : index
    %c0_16 = arith.constant 0 : index
    %14 = vector.load %arg10[%c0_15, %c0_16] : memref<64x512xf32, #tpu.memory_space<vmem>>, vector<8x512xf32>
    %15 = vector.extract_strided_slice %14 {offsets = [0, 0], sizes = [8, 128], strides = [1, 1]} : vector<8x512xf32> to vector<8x128xf32>
    %16 = arith.negf %15 : vector<8x128xf32>
    %17 = math.exp %16 : vector<8x128xf32>
    %cst_17 = arith.constant 1.000000e+00 : f32
    %18 = vector.broadcast %cst_17 : f32 to vector<8x128xf32>
    %19 = arith.addf %18, %17 : vector<8x128xf32>
    %20 = arith.divf %18, %19 : vector<8x128xf32>
    %21 = vector.extract_strided_slice %14 {offsets = [0, 128], sizes = [8, 128], strides = [1, 1]} : vector<8x512xf32> to vector<8x128xf32>
    %22 = arith.negf %21 : vector<8x128xf32>
    %23 = math.exp %22 : vector<8x128xf32>
    %cst_18 = arith.constant 1.000000e+00 : f32
    %24 = vector.broadcast %cst_18 : f32 to vector<8x128xf32>
    %25 = arith.addf %24, %23 : vector<8x128xf32>
    %26 = arith.divf %24, %25 : vector<8x128xf32>
    %27 = vector.extract_strided_slice %14 {offsets = [0, 256], sizes = [8, 128], strides = [1, 1]} : vector<8x512xf32> to vector<8x128xf32>
    %28 = math.tanh %27 : vector<8x128xf32>
    %29 = vector.extract_strided_slice %14 {offsets = [0, 384], sizes = [8, 128], strides = [1, 1]} : vector<8x512xf32> to vector<8x128xf32>
    %30 = arith.negf %29 : vector<8x128xf32>
    %31 = math.exp %30 : vector<8x128xf32>
    %cst_19 = arith.constant 1.000000e+00 : f32
    %32 = vector.broadcast %cst_19 : f32 to vector<8x128xf32>
    %33 = arith.addf %32, %31 : vector<8x128xf32>
    %34 = arith.divf %32, %33 : vector<8x128xf32>
    %35 = arith.mulf %26, %13 : vector<8x128xf32>
    %36 = arith.mulf %20, %28 : vector<8x128xf32>
    %37 = arith.addf %35, %36 : vector<8x128xf32>
    %38 = math.tanh %37 : vector<8x128xf32>
    %39 = arith.mulf %34, %38 : vector<8x128xf32>
    %c1_i32 = arith.constant 1 : i32
    %c7_i32 = arith.constant 7 : i32
    %40 = arith.addi %c1_i32, %c7_i32 : i32
    %c1_i32_20 = arith.constant 1 : i32
    %41:4 = scf.for %arg11 = %c1_i32 to %40 step %c1_i32_20 iter_args(%arg12 = %39, %arg13 = %37, %arg14 = %13, %arg15 = %13) -> (vector<8x128xf32>, vector<8x128xf32>, vector<8x128xf32>, vector<8x128xf32>)  : i32 {
      %76 = tpu.concatenate %arg12, %arg14 in 1 : vector<8x128xf32>, vector<8x128xf32> -> vector<8x256xf32>
      %cst_33 = arith.constant dense<0.000000e+00> : vector<8x512xf32>
      %77 = tpu.matmul %76, %9, %cst_33 {dimension_numbers = #tpu.dot_dimension_numbers<[1], [0], [0], [1], [0, 0, 1, 1], [], []>} : vector<8x256xf32>, vector<256x512xf32>, vector<8x512xf32> -> vector<8x512xf32>
      %78 = arith.addf %77, %12 : vector<8x512xf32>
      %79 = vector.extract_strided_slice %78 {offsets = [0, 0], sizes = [8, 128], strides = [1, 1]} : vector<8x512xf32> to vector<8x128xf32>
      %80 = arith.negf %79 : vector<8x128xf32>
      %81 = math.exp %80 : vector<8x128xf32>
      %cst_34 = arith.constant 1.000000e+00 : f32
      %82 = vector.broadcast %cst_34 : f32 to vector<8x128xf32>
      %83 = arith.addf %82, %81 : vector<8x128xf32>
      %84 = arith.divf %82, %83 : vector<8x128xf32>
      %85 = vector.extract_strided_slice %78 {offsets = [0, 128], sizes = [8, 128], strides = [1, 1]} : vector<8x512xf32> to vector<8x128xf32>
      %86 = arith.negf %85 : vector<8x128xf32>
      %87 = math.exp %86 : vector<8x128xf32>
      %cst_35 = arith.constant 1.000000e+00 : f32
      %88 = vector.broadcast %cst_35 : f32 to vector<8x128xf32>
      %89 = arith.addf %88, %87 : vector<8x128xf32>
      %90 = arith.divf %88, %89 : vector<8x128xf32>
      %91 = vector.extract_strided_slice %78 {offsets = [0, 256], sizes = [8, 128], strides = [1, 1]} : vector<8x512xf32> to vector<8x128xf32>
      %92 = math.tanh %91 : vector<8x128xf32>
      %93 = vector.extract_strided_slice %78 {offsets = [0, 384], sizes = [8, 128], strides = [1, 1]} : vector<8x512xf32> to vector<8x128xf32>
      %94 = arith.negf %93 : vector<8x128xf32>
      %95 = math.exp %94 : vector<8x128xf32>
      %cst_36 = arith.constant 1.000000e+00 : f32
      %96 = vector.broadcast %cst_36 : f32 to vector<8x128xf32>
      %97 = arith.addf %96, %95 : vector<8x128xf32>
      %98 = arith.divf %96, %97 : vector<8x128xf32>
      %99 = arith.mulf %90, %arg15 : vector<8x128xf32>
      %100 = arith.mulf %84, %92 : vector<8x128xf32>
      %101 = arith.addf %99, %100 : vector<8x128xf32>
      %102 = math.tanh %101 : vector<8x128xf32>
      %103 = arith.mulf %98, %102 : vector<8x128xf32>
      %c8_i32 = arith.constant 8 : i32
      %104 = arith.muli %arg11, %c8_i32 : i32
      %105 = tpu.assume_multiple %104, 8 : i32
      %106 = arith.index_cast %105 : i32 to index
      %c0_37 = arith.constant 0 : index
      %107 = vector.load %arg10[%106, %c0_37] : memref<64x512xf32, #tpu.memory_space<vmem>>, vector<8x512xf32>
      %cst_38 = arith.constant dense<0.000000e+00> : vector<8x512xf32>
      %108 = tpu.matmul %arg12, %8, %cst_38 {dimension_numbers = #tpu.dot_dimension_numbers<[1], [0], [0], [1], [0, 0, 1, 1], [], []>} : vector<8x128xf32>, vector<128x512xf32>, vector<8x512xf32> -> vector<8x512xf32>
      %109 = arith.addf %107, %108 : vector<8x512xf32>
      %110 = vector.extract_strided_slice %109 {offsets = [0, 0], sizes = [8, 128], strides = [1, 1]} : vector<8x512xf32> to vector<8x128xf32>
      %111 = arith.negf %110 : vector<8x128xf32>
      %112 = math.exp %111 : vector<8x128xf32>
      %cst_39 = arith.constant 1.000000e+00 : f32
      %113 = vector.broadcast %cst_39 : f32 to vector<8x128xf32>
      %114 = arith.addf %113, %112 : vector<8x128xf32>
      %115 = arith.divf %113, %114 : vector<8x128xf32>
      %116 = vector.extract_strided_slice %109 {offsets = [0, 128], sizes = [8, 128], strides = [1, 1]} : vector<8x512xf32> to vector<8x128xf32>
      %117 = arith.negf %116 : vector<8x128xf32>
      %118 = math.exp %117 : vector<8x128xf32>
      %cst_40 = arith.constant 1.000000e+00 : f32
      %119 = vector.broadcast %cst_40 : f32 to vector<8x128xf32>
      %120 = arith.addf %119, %118 : vector<8x128xf32>
      %121 = arith.divf %119, %120 : vector<8x128xf32>
      %122 = vector.extract_strided_slice %109 {offsets = [0, 256], sizes = [8, 128], strides = [1, 1]} : vector<8x512xf32> to vector<8x128xf32>
      %123 = math.tanh %122 : vector<8x128xf32>
      %124 = vector.extract_strided_slice %109 {offsets = [0, 384], sizes = [8, 128], strides = [1, 1]} : vector<8x512xf32> to vector<8x128xf32>
      %125 = arith.negf %124 : vector<8x128xf32>
      %126 = math.exp %125 : vector<8x128xf32>
      %cst_41 = arith.constant 1.000000e+00 : f32
      %127 = vector.broadcast %cst_41 : f32 to vector<8x128xf32>
      %128 = arith.addf %127, %126 : vector<8x128xf32>
      %129 = arith.divf %127, %128 : vector<8x128xf32>
      %130 = arith.mulf %121, %arg13 : vector<8x128xf32>
      %131 = arith.mulf %115, %123 : vector<8x128xf32>
      %132 = arith.addf %130, %131 : vector<8x128xf32>
      %133 = math.tanh %132 : vector<8x128xf32>
      %134 = arith.mulf %129, %133 : vector<8x128xf32>
      scf.yield %134, %132, %103, %101 : vector<8x128xf32>, vector<8x128xf32>, vector<8x128xf32>, vector<8x128xf32>
    }
    %c7_i32_21 = arith.constant 7 : i32
    %42 = tpu.concatenate %41#0, %41#2 in 1 : vector<8x128xf32>, vector<8x128xf32> -> vector<8x256xf32>
    %cst_22 = arith.constant dense<0.000000e+00> : vector<8x512xf32>
    %43 = tpu.matmul %42, %9, %cst_22 {dimension_numbers = #tpu.dot_dimension_numbers<[1], [0], [0], [1], [0, 0, 1, 1], [], []>} : vector<8x256xf32>, vector<256x512xf32>, vector<8x512xf32> -> vector<8x512xf32>
    %44 = arith.addf %43, %12 : vector<8x512xf32>
    %45 = vector.extract_strided_slice %44 {offsets = [0, 0], sizes = [8, 128], strides = [1, 1]} : vector<8x512xf32> to vector<8x128xf32>
    %46 = arith.negf %45 : vector<8x128xf32>
    %47 = math.exp %46 : vector<8x128xf32>
    %cst_23 = arith.constant 1.000000e+00 : f32
    %48 = vector.broadcast %cst_23 : f32 to vector<8x128xf32>
    %49 = arith.addf %48, %47 : vector<8x128xf32>
    %50 = arith.divf %48, %49 : vector<8x128xf32>
    %51 = vector.extract_strided_slice %44 {offsets = [0, 128], sizes = [8, 128], strides = [1, 1]} : vector<8x512xf32> to vector<8x128xf32>
    %52 = arith.negf %51 : vector<8x128xf32>
    %53 = math.exp %52 : vector<8x128xf32>
    %cst_24 = arith.constant 1.000000e+00 : f32
    %54 = vector.broadcast %cst_24 : f32 to vector<8x128xf32>
    %55 = arith.addf %54, %53 : vector<8x128xf32>
    %56 = arith.divf %54, %55 : vector<8x128xf32>
    %57 = vector.extract_strided_slice %44 {offsets = [0, 256], sizes = [8, 128], strides = [1, 1]} : vector<8x512xf32> to vector<8x128xf32>
    %58 = math.tanh %57 : vector<8x128xf32>
    %59 = vector.extract_strided_slice %44 {offsets = [0, 384], sizes = [8, 128], strides = [1, 1]} : vector<8x512xf32> to vector<8x128xf32>
    %60 = arith.negf %59 : vector<8x128xf32>
    %61 = math.exp %60 : vector<8x128xf32>
    %cst_25 = arith.constant 1.000000e+00 : f32
    %62 = vector.broadcast %cst_25 : f32 to vector<8x128xf32>
    %63 = arith.addf %62, %61 : vector<8x128xf32>
    %64 = arith.divf %62, %63 : vector<8x128xf32>
    %65 = arith.mulf %56, %41#3 : vector<8x128xf32>
    %66 = arith.mulf %50, %58 : vector<8x128xf32>
    %67 = arith.addf %65, %66 : vector<8x128xf32>
    %68 = math.tanh %67 : vector<8x128xf32>
    %69 = arith.mulf %64, %68 : vector<8x128xf32>
    %c0_26 = arith.constant 0 : index
    %c0_27 = arith.constant 0 : index
    %70 = vector.load %arg7[%c0_26, %c0_27] : memref<128x128xf32, #tpu.memory_space<vmem>>, vector<128x128xf32>
    %cst_28 = arith.constant dense<0.000000e+00> : vector<8x128xf32>
    %71 = tpu.matmul %69, %70, %cst_28 {dimension_numbers = #tpu.dot_dimension_numbers<[1], [0], [0], [1], [0, 0, 1, 1], [], []>} : vector<8x128xf32>, vector<128x128xf32>, vector<8x128xf32> -> vector<8x128xf32>
    %c0_29 = arith.constant 0 : index
    %c0_30 = arith.constant 0 : index
    %72 = vector.load %arg8[%c0_29, %c0_30] : memref<1x128xf32, #tpu.memory_space<vmem>>, vector<1x128xf32>
    %73 = vector.broadcast %72 : vector<1x128xf32> to vector<8x128xf32>
    %74 = arith.addf %71, %73 : vector<8x128xf32>
    %c0_31 = arith.constant 0 : index
    %c0_32 = arith.constant 0 : index
    %75 = vector.load %arg9[%c0_31, %c0_32] : memref<8x128xf32, #tpu.memory_space<vmem>>, vector<8x128xf32>
    tpu.vector_store %arg9[%c0_31, %c0_32], %74 {strides = array<i32>} : memref<8x128xf32, #tpu.memory_space<vmem>>, vector<8x128xf32>,
    return
  }
  func.func @transform_0(%arg0: i32) -> (i32, i32, i32) {
    %c0_i32 = arith.constant 0 : i32
    %c0_i32_0 = arith.constant 0 : i32
    %c0_i32_1 = arith.constant 0 : i32
    return %c0_i32, %arg0, %c0_i32_0 : i32, i32, i32
  }
  func.func @transform_1(%arg0: i32) -> (i32, i32) {
    %c0_i32 = arith.constant 0 : i32
    %c0_i32_0 = arith.constant 0 : i32
    %c0_i32_1 = arith.constant 0 : i32
    return %c0_i32, %c0_i32_0 : i32, i32
  }
  func.func @transform_2(%arg0: i32) -> (i32, i32) {
    %c0_i32 = arith.constant 0 : i32
    %c0_i32_0 = arith.constant 0 : i32
    %c0_i32_1 = arith.constant 0 : i32
    return %c0_i32, %c0_i32_0 : i32, i32
  }
  func.func @transform_3(%arg0: i32) -> (i32, i32) {
    %c0_i32 = arith.constant 0 : i32
    %c0_i32_0 = arith.constant 0 : i32
    %c0_i32_1 = arith.constant 0 : i32
    return %c0_i32, %c0_i32_0 : i32, i32
  }
  func.func @transform_4(%arg0: i32) -> (i32, i32) {
    %c0_i32 = arith.constant 0 : i32
    %c0_i32_0 = arith.constant 0 : i32
    %c0_i32_1 = arith.constant 0 : i32
    return %c0_i32, %c0_i32_0 : i32, i32
  }
  func.func @transform_5(%arg0: i32) -> (i32, i32) {
    %c0_i32 = arith.constant 0 : i32
    %c0_i32_0 = arith.constant 0 : i32
    %c0_i32_1 = arith.constant 0 : i32
    return %c0_i32, %c0_i32_0 : i32, i32
  }
  func.func @transform_6(%arg0: i32) -> (i32, i32) {
    %c0_i32 = arith.constant 0 : i32
    %c0_i32_0 = arith.constant 0 : i32
    %c0_i32_1 = arith.constant 0 : i32
    return %c0_i32, %c0_i32_0 : i32, i32
  }
  func.func @transform_7(%arg0: i32) -> (i32, i32) {
    %c0_i32 = arith.constant 0 : i32
    %c0_i32_0 = arith.constant 0 : i32
    %c0_i32_1 = arith.constant 0 : i32
    return %c0_i32, %c0_i32_0 : i32, i32
  }
  func.func @transform_8(%arg0: i32) -> (i32, i32) {
    %c0_i32 = arith.constant 0 : i32
    %c0_i32_0 = arith.constant 0 : i32
    return %arg0, %c0_i32 : i32, i32
  }
}

</mosaic_0001>

<bundles_post_ra>
// kernel: tpu_custom_call.1
= control target key start
LH: loop header
LB: loop body
LE: loop exit
PB: predicated region body
PF: predicated region fallthrough
CT: control target
= control target key end

     0   :  { %13 = vsyncpa [#allocation4], 0  ;;  %s3175_s0 = inlined_call_operand.hbm [shape: f32[8,8,16], index: 0, kind: input, shape index: {}]   ;;  %s3176_s1 = inlined_call_operand.hbm [shape: f32[16,512], index: 1, kind: input, shape index: {}]   ;;  %s3177_s2 = inlined_call_operand.hbm [shape: f32[128,512], index: 2, kind: input, shape index: {}]   ;;  %s3178_s3 = inlined_call_operand.vmem [shape: f32[1,512], index: 3, kind: input, shape index: {}]   ;;  %s3179_s4 = inlined_call_operand.hbm [shape: f32[256,512], index: 4, kind: input, shape index: {}]   ;;  %s3180_s5 = inlined_call_operand.vmem [shape: f32[1,512], index: 5, kind: input, shape index: {}]   ;;  %s3181_s6 = inlined_call_operand.hbm [shape: f32[128,128], index: 6, kind: input, shape index: {}]   ;;  %s3182_s7 = inlined_call_operand.vmem [shape: f32[1,128], index: 7, kind: input, shape index: {}]   ;;  %s3183_s8 = inlined_call_operand.hbm [shape: f32[8,128], index: 8, kind: output, shape index: {}]  }
   0x1   :  { %14 = vsyncpa [#allocation7], 0 }
   0x2   :  { %15 = vsyncpa [#allocation10], 0 }
   0x3   :  { %16 = vsyncpa [#allocation5], 0  ;;  %s2048_s27 = smov [#allocation6]   ;;  %s1868_s9 = scalar_lea.hbm %s3176_s1, 1024 }
   0x4   :  { %s34_s28 = sshll.u32 %s2048_s27, 4  ;;  %p1869_p0 = scmp.ne.s32.totalorder %s3176_s1, %s1868_s9  ;;  %s35_s28 = int_to_ptr.vmem [resolvable:$true] %s34_s28 }
   0x5   :  { %p1872_p1 = scmp.lt.u32.totalorder %s1868_s9, %s3176_s1 }
   0x7   :  { %p1874_p2 = pnand %p1872_p1, %p1869_p0 }
   0x9   :  { %1877 = shalt.err (!%p1874_p2)
}
   0xa   :  { %s1878_s14 = scalar_lea.vmem %s35_s28, 1024  ;;  %p1883_p4 = scmp.lt.s32.totalorder %s35_s28, %s35_s28 }
   0xb   :  { %p1879_p3 = scmp.ne.s32.totalorder %s35_s28, %s1878_s14  ;;  %p1884_p5 = scmp.lt.s32.totalorder %s1878_s14, %s1878_s14 }
   0xd   :  { %p1885_p6 = por %p1884_p5, %p1883_p4 }
   0xf   :  { %p1886_p7 = pnand %p1885_p6, %p1879_p3 }
  0x11   :  { %1889 = shalt.err (!%p1886_p7)
}
  0x12   :  { %s2049_s15 = smov 512   ;;  %s2050_s16 = smov 32  }
  0x13   :  { %40 = dma.hbm_to_vmem [thread:$0]  %s3176_s1, 1024, %s35_s28, [#allocation7], %s2049_s15, %s2049_s15, %s2050_s16  }
  0x14   :  { %s2051_s19 = smov [#allocation9]   ;;  %s2052_s21 = smov [#allocation3]  }
  0x15   :  { %s60_s20 = sshll.u32 %s2051_s19, 4  ;;  %s22_s22 = sshll.u32 %s2052_s21, 4  ;;  %s61_s20 = int_to_ptr.vmem [resolvable:$true] %s60_s20  ;;  %s23_s22 = int_to_ptr.vmem [resolvable:$true] %s22_s22 }
  0x16   :  { %s1890_s25 = scalar_lea.hbm %s3179_s4, 16384 }
  0x17   :  { %p1891_p8 = scmp.ne.s32.totalorder %s3179_s4, %s1890_s25  ;;  %p1894_p9 = scmp.lt.u32.totalorder %s1890_s25, %s3179_s4 }
  0x19   :  { %p1896_p10 = pnand %p1894_p9, %p1891_p8 }
  0x1b   :  { %1899 = shalt.err (!%p1896_p10)
}
  0x1c   :  { %s1900_s1 = scalar_lea.vmem %s61_s20, 16384  ;;  %p1905_p12 = scmp.lt.s32.totalorder %s61_s20, %s61_s20 }
  0x1d   :  { %p1901_p11 = scmp.ne.s32.totalorder %s61_s20, %s1900_s1  ;;  %p1906_p13 = scmp.lt.s32.totalorder %s1900_s1, %s1900_s1 }
  0x1f   :  { %p1907_p0 = por %p1906_p13, %p1905_p12 }
  0x21   :  { %p1908_p1 = pnand %p1907_p0, %p1901_p11 }
  0x23   :  { %1911 = shalt.err (!%p1908_p1)
}
  0x24   :  { %66 = dma.hbm_to_vmem [thread:$0]  %s3179_s4, 16384, %s61_s20, [#allocation10], %s2049_s15, %s2049_s15, %s2050_s16  }
  0x25   :  { %s1912_s12 = scalar_lea.hbm %s3175_s0, 1024 }
  0x26   :  { %p1913_p2 = scmp.ne.s32.totalorder %s3175_s0, %s1912_s12  ;;  %p1916_p3 = scmp.lt.u32.totalorder %s1912_s12, %s3175_s0 }
  0x28   :  { %p1918_p4 = pnand %p1916_p3, %p1913_p2 }
  0x2a   :  { %1921 = shalt.err (!%p1918_p4)
}
  0x2b   :  { %s1922_s19 = scalar_lea.vmem %s23_s22, 1024  ;;  %p1927_p6 = scmp.lt.s32.totalorder %s23_s22, %s23_s22 }
  0x2c   :  { %p1923_p5 = scmp.ne.s32.totalorder %s23_s22, %s1922_s19  ;;  %p1928_p7 = scmp.lt.s32.totalorder %s1922_s19, %s1922_s19 }
  0x2e   :  { %p1929_p8 = por %p1928_p7, %p1927_p6 }
  0x30   :  { %p1930_p9 = pnand %p1929_p8, %p1923_p5 }
  0x32   :  { %1933 = shalt.err (!%p1930_p9)
}
  0x33   :  { %s2053_s4 = smov 128   ;;  %s2054_s20 = smov 8  }
  0x34   :  { %28 = dma.hbm_to_vmem [thread:$0]  %s3175_s0, 1024, %s23_s22, [#allocation4], %s2053_s4, %s2053_s4, %s2054_s20  }
  0x35   :  { %s2055_s24 = smov [#allocation8]   ;;  %s2056_s26 = smov [#allocation11]  }
  0x36   :  { %s46_s25 = sshll.u32 %s2055_s24, 4  ;;  %s74_s27 = sshll.u32 %s2056_s26, 4  ;;  %s47_s25 = int_to_ptr.vmem [resolvable:$true] %s46_s25  ;;  %s75_s27 = int_to_ptr.vmem [resolvable:$true] %s74_s27 }
  0x37   :  { %s1934_s1 = scalar_lea.hbm %s3177_s2, 8192 }
  0x38   :  { %p1935_p10 = scmp.ne.s32.totalorder %s3177_s2, %s1934_s1  ;;  %p1938_p11 = scmp.lt.u32.totalorder %s1934_s1, %s3177_s2 }
  0x3a   :  { %p1940_p12 = pnand %p1938_p11, %p1935_p10 }
  0x3c   :  { %1943 = shalt.err (!%p1940_p12)
}
  0x3d   :  { %s1944_s0 = scalar_lea.vmem %s47_s25, 8192  ;;  %p1949_p0 = scmp.lt.s32.totalorder %s47_s25, %s47_s25 }
  0x3e   :  { %p1945_p13 = scmp.ne.s32.totalorder %s47_s25, %s1944_s0  ;;  %p1950_p1 = scmp.lt.s32.totalorder %s1944_s0, %s1944_s0 }
  0x40   :  { %p1951_p2 = por %p1950_p1, %p1949_p0 }
  0x42   :  { %p1952_p3 = pnand %p1951_p2, %p1945_p13 }
  0x44   :  { %1955 = shalt.err (!%p1952_p3)
}
  0x45   :  { %52 = dma.hbm_to_vmem [thread:$0]  %s3177_s2, 8192, %s47_s25, [#allocation7], %s2049_s15, %s2049_s15, %s2050_s16  }
  0x46   :  { %s1956_s17 = scalar_lea.hbm %s3181_s6, 2048 }
  0x47   :  { %p1957_p4 = scmp.ne.s32.totalorder %s3181_s6, %s1956_s17  ;;  %p1960_p5 = scmp.lt.u32.totalorder %s1956_s17, %s3181_s6 }
  0x49   :  { %p1962_p6 = pnand %p1960_p5, %p1957_p4 }
  0x4b   :  { %1965 = shalt.err (!%p1962_p6)
}
  0x4c   :  { %s1966_s24 = scalar_lea.vmem %s75_s27, 2048  ;;  %p1971_p8 = scmp.lt.s32.totalorder %s75_s27, %s75_s27 }
  0x4d   :  { %p1967_p7 = scmp.ne.s32.totalorder %s75_s27, %s1966_s24  ;;  %p1972_p9 = scmp.lt.s32.totalorder %s1966_s24, %s1966_s24 }
  0x4f   :  { %p1973_p10 = por %p1972_p9, %p1971_p8 }
  0x51   :  { %p1974_p11 = pnand %p1973_p10, %p1967_p7 }
  0x53   :  { %1977 = shalt.err (!%p1974_p11)
}
  0x54   :  { %80 = dma.hbm_to_vmem [thread:$0]  %s3181_s6, 2048, %s75_s27, [#allocation10], %s2053_s4, %s2053_s4, %s2054_s20  }
  0x55   :  { %2020 = dma.done.wait [#allocation4], 1024  }
  0x56   :  { %2021 = vsyncadd [#allocation4], 4294966272 }
  0x57   :  { %2022 = dma.done.wait [#allocation7], 9216  }
  0x58   :  { %2023 = vsyncadd [#allocation7], 4294958080 }
  0x59   :  { %2024 = dma.done.wait [#allocation10], 18432  }
  0x5a   :  { %2025 = vsyncadd [#allocation10], 4294948864  ;;  %v3184_v0 = vmov 0.0   ;;  %v2184_v1 = vld [vmem:[#allocation8] sm:$0xff]  ;;  %v2186_v2 = vld [vmem:[#allocation8 + $0x8] sm:$0xff]  ;;  %vm136_vm0 = vcmask 130048  }
  0x5b   :  { %225 = vmatprep.mubr.f32.mxu0 %v3184_v0  ;;  %338 = vmatprep.mubr.f32.mxu1 %v3184_v0  ;;  %3209 = vst [vmem:[#allocation17_spill] sm:$0xff] %v2184_v1  ;;  %3210 = vst [vmem:[#allocation18_spill] sm:$0xff] %v2186_v2  ;;  %v2188_v3 = vld [vmem:[#allocation8 + $0x10] sm:$0xff]  ;;  %v2190_v4 = vld [vmem:[#allocation8 + $0x18] sm:$0xff] }
  0x5c   :  { %3211 = vst [vmem:[#allocation19_spill] sm:$0xff] %v2188_v3  ;;  %3212 = vst [vmem:[#allocation20_spill] sm:$0xff] %v2190_v4  ;;  %v2192_v5 = vld [vmem:[#allocation8 + $0x20] sm:$0xff]  ;;  %v2194_v6 = vld [vmem:[#allocation8 + $0x28] sm:$0xff] }
  0x5d   :  { %3213 = vst [vmem:[#allocation21_spill] sm:$0xff] %v2192_v5  ;;  %3214 = vst [vmem:[#allocation22_spill] sm:$0xff] %v2194_v6  ;;  %v2196_v7 = vld [vmem:[#allocation8 + $0x30] sm:$0xff]  ;;  %v2198_v8 = vld [vmem:[#allocation8 + $0x38] sm:$0xff] }
  0x5e   :  { %3215 = vst [vmem:[#allocation23_spill] sm:$0xff] %v2196_v7  ;;  %3216 = vst [vmem:[#allocation24_spill] sm:$0xff] %v2198_v8  ;;  %v2200_v9 = vld [vmem:[#allocation8 + $0x40] sm:$0xff]  ;;  %v2202_v10 = vld [vmem:[#allocation8 + $0x48] sm:$0xff] }
  0x5f   :  { %3217 = vst [vmem:[#allocation25_spill] sm:$0xff] %v2200_v9  ;;  %3218 = vst [vmem:[#allocation26_spill] sm:$0xff] %v2202_v10  ;;  %v2204_v11 = vld [vmem:[#allocation8 + $0x50] sm:$0xff]  ;;  %v2206_v12 = vld [vmem:[#allocation8 + $0x58] sm:$0xff] }
  0x60   :  { %3219 = vst [vmem:[#allocation27_spill] sm:$0xff] %v2204_v11  ;;  %3220 = vst [vmem:[#allocation28_spill] sm:$0xff] %v2206_v12  ;;  %v2208_v13 = vld [vmem:[#allocation8 + $0x60] sm:$0xff]  ;;  %v2210_v14 = vld [vmem:[#allocation8 + $0x68] sm:$0xff] }
  0x61   :  { %3221 = vst [vmem:[#allocation29_spill] sm:$0xff] %v2208_v13  ;;  %3222 = vst [vmem:[#allocation30_spill] sm:$0xff] %v2210_v14  ;;  %v2212_v15 = vld [vmem:[#allocation8 + $0x70] sm:$0xff]  ;;  %v2214_v16 = vld [vmem:[#allocation8 + $0x78] sm:$0xff] }
  0x62   :  { %3223 = vst [vmem:[#allocation31_spill] sm:$0xff] %v2212_v15  ;;  %3224 = vst [vmem:[#allocation32_spill] sm:$0xff] %v2214_v16  ;;  %v2216_v17 = vld [vmem:[#allocation8 + $0x80] sm:$0xff]  ;;  %v2218_v18 = vld [vmem:[#allocation8 + $0x88] sm:$0xff] }
  0x63   :  { %3225 = vst [vmem:[#allocation33_spill] sm:$0xff] %v2216_v17  ;;  %3226 = vst [vmem:[#allocation34_spill] sm:$0xff] %v2218_v18  ;;  %v2220_v19 = vld [vmem:[#allocation8 + $0x90] sm:$0xff]  ;;  %v2222_v20 = vld [vmem:[#allocation8 + $0x98] sm:$0xff] }
  0x64   :  { %3227 = vst [vmem:[#allocation35_spill] sm:$0xff] %v2220_v19  ;;  %3228 = vst [vmem:[#allocation36_spill] sm:$0xff] %v2222_v20  ;;  %v2224_v21 = vld [vmem:[#allocation8 + $0xa0] sm:$0xff]  ;;  %v2226_v22 = vld [vmem:[#allocation8 + $0xa8] sm:$0xff] }
  0x65   :  { %3229 = vst [vmem:[#allocation37_spill] sm:$0xff] %v2224_v21  ;;  %3230 = vst [vmem:[#allocation38_spill] sm:$0xff] %v2226_v22  ;;  %v2228_v23 = vld [vmem:[#allocation8 + $0xb0] sm:$0xff]  ;;  %v2230_v24 = vld [vmem:[#allocation8 + $0xb8] sm:$0xff] }
  0x66   :  { %3231 = vst [vmem:[#allocation39_spill] sm:$0xff] %v2228_v23  ;;  %3232 = vst [vmem:[#allocation40_spill] sm:$0xff] %v2230_v24  ;;  %v2232_v25 = vld [vmem:[#allocation8 + $0xc0] sm:$0xff]  ;;  %v2234_v26 = vld [vmem:[#allocation8 + $0xc8] sm:$0xff] }
  0x67   :  { %3233 = vst [vmem:[#allocation41_spill] sm:$0xff] %v2232_v25  ;;  %3234 = vst [vmem:[#allocation42_spill] sm:$0xff] %v2234_v26  ;;  %v2236_v27 = vld [vmem:[#allocation8 + $0xd0] sm:$0xff]  ;;  %v2238_v28 = vld [vmem:[#allocation8 + $0xd8] sm:$0xff] }
  0x68   :  { %3235 = vst [vmem:[#allocation43_spill] sm:$0xff] %v2236_v27  ;;  %3236 = vst [vmem:[#allocation44_spill] sm:$0xff] %v2238_v28  ;;  %v2240_v29 = vld [vmem:[#allocation8 + $0xe0] sm:$0xff]  ;;  %v2242_v30 = vld [vmem:[#allocation8 + $0xe8] sm:$0xff] }
  0x69   :  { %3237 = vst [vmem:[#allocation45_spill] sm:$0xff] %v2240_v29  ;;  %3238 = vst [vmem:[#allocation46_spill] sm:$0xff] %v2242_v30  ;;  %v2244_v31 = vld [vmem:[#allocation8 + $0xf0] sm:$0xff]  ;;  %v2246_v32 = vld [vmem:[#allocation8 + $0xf8] sm:$0xff] }
  0x6a   :  { %3239 = vst [vmem:[#allocation47_spill] sm:$0xff] %v2244_v31  ;;  %3240 = vst [vmem:[#allocation48_spill] sm:$0xff] %v2246_v32  ;;  %v2248_v33 = vld [vmem:[#allocation8 + $0x100] sm:$0xff]  ;;  %v2250_v34 = vld [vmem:[#allocation8 + $0x108] sm:$0xff] }
  0x6b   :  { %3241 = vst [vmem:[#allocation49_spill] sm:$0xff] %v2248_v33  ;;  %3242 = vst [vmem:[#allocation50_spill] sm:$0xff] %v2250_v34  ;;  %v2252_v35 = vld [vmem:[#allocation8 + $0x110] sm:$0xff]  ;;  %v2254_v36 = vld [vmem:[#allocation8 + $0x118] sm:$0xff] }
  0x6c   :  { %3243 = vst [vmem:[#allocation51_spill] sm:$0xff] %v2252_v35  ;;  %3244 = vst [vmem:[#allocation52_spill] sm:$0xff] %v2254_v36  ;;  %v2256_v37 = vld [vmem:[#allocation8 + $0x120] sm:$0xff]  ;;  %v2258_v38 = vld [vmem:[#allocation8 + $0x128] sm:$0xff] }
  0x6d   :  { %3245 = vst [vmem:[#allocation53_spill] sm:$0xff] %v2256_v37  ;;  %3246 = vst [vmem:[#allocation54_spill] sm:$0xff] %v2258_v38  ;;  %v2260_v39 = vld [vmem:[#allocation8 + $0x130] sm:$0xff]  ;;  %v2262_v40 = vld [vmem:[#allocation8 + $0x138] sm:$0xff] }
  0x6e   :  { %3247 = vst [vmem:[#allocation55_spill] sm:$0xff] %v2260_v39  ;;  %3248 = vst [vmem:[#allocation56_spill] sm:$0xff] %v2262_v40  ;;  %v2264_v41 = vld [vmem:[#allocation8 + $0x140] sm:$0xff]  ;;  %v2266_v42 = vld [vmem:[#allocation8 + $0x148] sm:$0xff] }
  0x6f   :  { %3249 = vst [vmem:[#allocation57_spill] sm:$0xff] %v2264_v41  ;;  %3250 = vst [vmem:[#allocation58_spill] sm:$0xff] %v2266_v42  ;;  %v2268_v43 = vld [vmem:[#allocation8 + $0x150] sm:$0xff]  ;;  %v2270_v44 = vld [vmem:[#allocation8 + $0x158] sm:$0xff] }
  0x70   :  { %3251 = vst [vmem:[#allocation59_spill] sm:$0xff] %v2268_v43  ;;  %3252 = vst [vmem:[#allocation60_spill] sm:$0xff] %v2270_v44  ;;  %v2272_v45 = vld [vmem:[#allocation8 + $0x160] sm:$0xff]  ;;  %v2274_v46 = vld [vmem:[#allocation8 + $0x168] sm:$0xff] }
  0x71   :  { %3253 = vst [vmem:[#allocation61_spill] sm:$0xff] %v2272_v45  ;;  %3254 = vst [vmem:[#allocation62_spill] sm:$0xff] %v2274_v46  ;;  %v2276_v47 = vld [vmem:[#allocation8 + $0x170] sm:$0xff]  ;;  %v2278_v48 = vld [vmem:[#allocation8 + $0x178] sm:$0xff] }
  0x72   :  { %3255 = vst [vmem:[#allocation63_spill] sm:$0xff] %v2276_v47  ;;  %3256 = vst [vmem:[#allocation64_spill] sm:$0xff] %v2278_v48  ;;  %v2280_v49 = vld [vmem:[#allocation8 + $0x180] sm:$0xff]  ;;  %v2282_v50 = vld [vmem:[#allocation8 + $0x188] sm:$0xff] }
  0x73   :  { %3257 = vst [vmem:[#allocation65_spill] sm:$0xff] %v2280_v49  ;;  %3258 = vst [vmem:[#allocation66_spill] sm:$0xff] %v2282_v50  ;;  %v2284_v51 = vld [vmem:[#allocation8 + $0x190] sm:$0xff]  ;;  %v2286_v52 = vld [vmem:[#allocation8 + $0x198] sm:$0xff] }
  0x74   :  { %3259 = vst [vmem:[#allocation67_spill] sm:$0xff] %v2284_v51  ;;  %3260 = vst [vmem:[#allocation68_spill] sm:$0xff] %v2286_v52  ;;  %v2288_v53 = vld [vmem:[#allocation8 + $0x1a0] sm:$0xff]  ;;  %v2290_v54 = vld [vmem:[#allocation8 + $0x1a8] sm:$0xff] }
  0x75   :  { %3261 = vst [vmem:[#allocation69_spill] sm:$0xff] %v2288_v53  ;;  %3262 = vst [vmem:[#allocation70_spill] sm:$0xff] %v2290_v54  ;;  %v2292_v55 = vld [vmem:[#allocation8 + $0x1b0] sm:$0xff]  ;;  %v2294_v56 = vld [vmem:[#allocation8 + $0x1b8] sm:$0xff] }
  0x76   :  { %3263 = vst [vmem:[#allocation71_spill] sm:$0xff] %v2292_v55  ;;  %3264 = vst [vmem:[#allocation72_spill] sm:$0xff] %v2294_v56  ;;  %v2296_v57 = vld [vmem:[#allocation8 + $0x1c0] sm:$0xff]  ;;  %v2298_v58 = vld [vmem:[#allocation8 + $0x1c8] sm:$0xff] }
  0x77   :  { %3265 = vst [vmem:[#allocation73_spill] sm:$0xff] %v2296_v57  ;;  %3266 = vst [vmem:[#allocation74_spill] sm:$0xff] %v2298_v58  ;;  %v2300_v59 = vld [vmem:[#allocation8 + $0x1d0] sm:$0xff]  ;;  %v2302_v60 = vld [vmem:[#allocation8 + $0x1d8] sm:$0xff] }
  0x78   :  { %3267 = vst [vmem:[#allocation75_spill] sm:$0xff] %v2300_v59  ;;  %3268 = vst [vmem:[#allocation76_spill] sm:$0xff] %v2302_v60  ;;  %v2304_v61 = vld [vmem:[#allocation8 + $0x1e0] sm:$0xff]  ;;  %v2306_v62 = vld [vmem:[#allocation8 + $0x1e8] sm:$0xff] }
  0x79   :  { %3269 = vst [vmem:[#allocation77_spill] sm:$0xff] %v2304_v61  ;;  %3270 = vst [vmem:[#allocation78_spill] sm:$0xff] %v2306_v62  ;;  %v2308_v63 = vld [vmem:[#allocation8 + $0x1f0] sm:$0xff]  ;;  %v2310_v0 = vld [vmem:[#allocation8 + $0x1f8] sm:$0xff] }
  0x7a   :  { %3271 = vst [vmem:[#allocation79_spill] sm:$0xff] %v2308_v63  ;;  %3272 = vst [vmem:[#allocation80_spill] sm:$0xff] %v2310_v0  ;;  %v2312_v51 = vld [vmem:[#allocation9] sm:$0xff]  ;;  %v2314_v55 = vld [vmem:[#allocation9 + $0x8] sm:$0xff] }
  0x7b   :  { %3273 = vst [vmem:[#allocation81_spill] sm:$0xff] %v2312_v51  ;;  %3274 = vst [vmem:[#allocation82_spill] sm:$0xff] %v2314_v55  ;;  %v2316_v53 = vld [vmem:[#allocation9 + $0x10] sm:$0xff]  ;;  %v2318_v57 = vld [vmem:[#allocation9 + $0x18] sm:$0xff] }
  0x7c   :  { %3275 = vst [vmem:[#allocation83_spill] sm:$0xff] %v2316_v53  ;;  %3276 = vst [vmem:[#allocation84_spill] sm:$0xff] %v2318_v57  ;;  %v2320_v58 = vld [vmem:[#allocation9 + $0x20] sm:$0xff]  ;;  %v2322_v59 = vld [vmem:[#allocation9 + $0x28] sm:$0xff] }
  0x7d   :  { %3277 = vst [vmem:[#allocation85_spill] sm:$0xff] %v2320_v58  ;;  %3278 = vst [vmem:[#allocation86_spill] sm:$0xff] %v2322_v59  ;;  %v2324_v60 = vld [vmem:[#allocation9 + $0x30] sm:$0xff]  ;;  %v2326_v61 = vld [vmem:[#allocation9 + $0x38] sm:$0xff] }
  0x7e   :  { %3279 = vst [vmem:[#allocation87_spill] sm:$0xff] %v2324_v60  ;;  %3280 = vst [vmem:[#allocation88_spill] sm:$0xff] %v2326_v61  ;;  %v2328_v62 = vld [vmem:[#allocation9 + $0x40] sm:$0xff]  ;;  %v2330_v63 = vld [vmem:[#allocation9 + $0x48] sm:$0xff] }
  0x7f   :  { %3281 = vst [vmem:[#allocation89_spill] sm:$0xff] %v2328_v62  ;;  %3282 = vst [vmem:[#allocation90_spill] sm:$0xff] %v2330_v63  ;;  %v2332_v0 = vld [vmem:[#allocation9 + $0x50] sm:$0xff]  ;;  %v2334_v49 = vld [vmem:[#allocation9 + $0x58] sm:$0xff] }
  0x80   :  { %3283 = vst [vmem:[#allocation91_spill] sm:$0xff] %v2332_v0  ;;  %3284 = vst [vmem:[#allocation92_spill] sm:$0xff] %v2334_v49  ;;  %v2336_v56 = vld [vmem:[#allocation9 + $0x60] sm:$0xff]  ;;  %v2338_v52 = vld [vmem:[#allocation9 + $0x68] sm:$0xff] }
  0x81   :  { %3285 = vst [vmem:[#allocation93_spill] sm:$0xff] %v2336_v56  ;;  %3286 = vst [vmem:[#allocation94_spill] sm:$0xff] %v2338_v52  ;;  %v2340_v47 = vld [vmem:[#allocation9 + $0x70] sm:$0xff]  ;;  %v2342_v43 = vld [vmem:[#allocation9 + $0x78] sm:$0xff] }
  0x82   :  { %3287 = vst [vmem:[#allocation95_spill] sm:$0xff] %v2340_v47  ;;  %3288 = vst [vmem:[#allocation96_spill] sm:$0xff] %v2342_v43  ;;  %v2344_v54 = vld [vmem:[#allocation9 + $0x80] sm:$0xff]  ;;  %v2346_v50 = vld [vmem:[#allocation9 + $0x88] sm:$0xff] }
  0x83   :  { %3289 = vst [vmem:[#allocation97_spill] sm:$0xff] %v2344_v54  ;;  %3290 = vst [vmem:[#allocation98_spill] sm:$0xff] %v2346_v50  ;;  %v2348_v45 = vld [vmem:[#allocation9 + $0x90] sm:$0xff]  ;;  %v2350_v41 = vld [vmem:[#allocation9 + $0x98] sm:$0xff] }
  0x84   :  { %3291 = vst [vmem:[#allocation99_spill] sm:$0xff] %v2348_v45  ;;  %3292 = vst [vmem:[#allocation100_spill] sm:$0xff] %v2350_v41  ;;  %v2352_v48 = vld [vmem:[#allocation9 + $0xa0] sm:$0xff]  ;;  %v2354_v44 = vld [vmem:[#allocation9 + $0xa8] sm:$0xff] }
  0x85   :  { %3293 = vst [vmem:[#allocation101_spill] sm:$0xff] %v2352_v48  ;;  %3294 = vst [vmem:[#allocation102_spill] sm:$0xff] %v2354_v44  ;;  %v2356_v39 = vld [vmem:[#allocation9 + $0xb0] sm:$0xff]  ;;  %v2358_v35 = vld [vmem:[#allocation9 + $0xb8] sm:$0xff] }
  0x86   :  { %3295 = vst [vmem:[#allocation103_spill] sm:$0xff] %v2356_v39  ;;  %3296 = vst [vmem:[#allocation104_spill] sm:$0xff] %v2358_v35  ;;  %v2360_v46 = vld [vmem:[#allocation9 + $0xc0] sm:$0xff]  ;;  %v2362_v42 = vld [vmem:[#allocation9 + $0xc8] sm:$0xff] }
  0x87   :  { %3297 = vst [vmem:[#allocation105_spill] sm:$0xff] %v2360_v46  ;;  %3298 = vst [vmem:[#allocation106_spill] sm:$0xff] %v2362_v42  ;;  %v2364_v37 = vld [vmem:[#allocation9 + $0xd0] sm:$0xff]  ;;  %v2366_v33 = vld [vmem:[#allocation9 + $0xd8] sm:$0xff] }
  0x88   :  { %3299 = vst [vmem:[#allocation107_spill] sm:$0xff] %v2364_v37  ;;  %3300 = vst [vmem:[#allocation108_spill] sm:$0xff] %v2366_v33  ;;  %v2368_v40 = vld [vmem:[#allocation9 + $0xe0] sm:$0xff]  ;;  %v2370_v36 = vld [vmem:[#allocation9 + $0xe8] sm:$0xff] }
  0x89   :  { %3301 = vst [vmem:[#allocation109_spill] sm:$0xff] %v2368_v40  ;;  %3302 = vst [vmem:[#allocation110_spill] sm:$0xff] %v2370_v36  ;;  %v2372_v31 = vld [vmem:[#allocation9 + $0xf0] sm:$0xff]  ;;  %v2374_v27 = vld [vmem:[#allocation9 + $0xf8] sm:$0xff] }
  0x8a   :  { %3303 = vst [vmem:[#allocation111_spill] sm:$0xff] %v2372_v31  ;;  %3304 = vst [vmem:[#allocation112_spill] sm:$0xff] %v2374_v27  ;;  %v2376_v38 = vld [vmem:[#allocation9 + $0x100] sm:$0xff]  ;;  %v2378_v34 = vld [vmem:[#allocation9 + $0x108] sm:$0xff] }
  0x8b   :  { %3305 = vst [vmem:[#allocation113_spill] sm:$0xff] %v2376_v38  ;;  %3306 = vst [vmem:[#allocation114_spill] sm:$0xff] %v2378_v34  ;;  %v2380_v29 = vld [vmem:[#allocation9 + $0x110] sm:$0xff]  ;;  %v2382_v25 = vld [vmem:[#allocation9 + $0x118] sm:$0xff] }
  0x8c   :  { %3307 = vst [vmem:[#allocation115_spill] sm:$0xff] %v2380_v29  ;;  %3308 = vst [vmem:[#allocation116_spill] sm:$0xff] %v2382_v25  ;;  %v2384_v32 = vld [vmem:[#allocation9 + $0x120] sm:$0xff]  ;;  %v2386_v28 = vld [vmem:[#allocation9 + $0x128] sm:$0xff] }
  0x8d   :  { %3309 = vst [vmem:[#allocation117_spill] sm:$0xff] %v2384_v32  ;;  %3310 = vst [vmem:[#allocation118_spill] sm:$0xff] %v2386_v28  ;;  %v2388_v23 = vld [vmem:[#allocation9 + $0x130] sm:$0xff]  ;;  %v2390_v19 = vld [vmem:[#allocation9 + $0x138] sm:$0xff] }
  0x8e   :  { %3311 = vst [vmem:[#allocation119_spill] sm:$0xff] %v2388_v23  ;;  %3312 = vst [vmem:[#allocation120_spill] sm:$0xff] %v2390_v19  ;;  %v2392_v30 = vld [vmem:[#allocation9 + $0x140] sm:$0xff]  ;;  %v2394_v26 = vld [vmem:[#allocation9 + $0x148] sm:$0xff] }
  0x8f   :  { %3313 = vst [vmem:[#allocation121_spill] sm:$0xff] %v2392_v30  ;;  %3314 = vst [vmem:[#allocation122_spill] sm:$0xff] %v2394_v26  ;;  %v2396_v21 = vld [vmem:[#allocation9 + $0x150] sm:$0xff]  ;;  %v2398_v17 = vld [vmem:[#allocation9 + $0x158] sm:$0xff] }
  0x90   :  { %3315 = vst [vmem:[#allocation123_spill] sm:$0xff] %v2396_v21  ;;  %3316 = vst [vmem:[#allocation124_spill] sm:$0xff] %v2398_v17  ;;  %v2400_v24 = vld [vmem:[#allocation9 + $0x160] sm:$0xff]  ;;  %v2402_v20 = vld [vmem:[#allocation9 + $0x168] sm:$0xff] }
  0x91   :  { %3317 = vst [vmem:[#allocation125_spill] sm:$0xff] %v2400_v24  ;;  %3318 = vst [vmem:[#allocation126_spill] sm:$0xff] %v2402_v20  ;;  %v2404_v15 = vld [vmem:[#allocation9 + $0x170] sm:$0xff]  ;;  %v2406_v11 = vld [vmem:[#allocation9 + $0x178] sm:$0xff] }
  0x92   :  { %3319 = vst [vmem:[#allocation127_spill] sm:$0xff] %v2404_v15  ;;  %3320 = vst [vmem:[#allocation128_spill] sm:$0xff] %v2406_v11  ;;  %v2408_v22 = vld [vmem:[#allocation9 + $0x180] sm:$0xff]  ;;  %v2410_v18 = vld [vmem:[#allocation9 + $0x188] sm:$0xff] }
  0x93   :  { %3321 = vst [vmem:[#allocation129_spill] sm:$0xff] %v2408_v22  ;;  %3322 = vst [vmem:[#allocation130_spill] sm:$0xff] %v2410_v18  ;;  %v2412_v13 = vld [vmem:[#allocation9 + $0x190] sm:$0xff]  ;;  %v2414_v9 = vld [vmem:[#allocation9 + $0x198] sm:$0xff] }
  0x94   :  { %3323 = vst [vmem:[#allocation131_spill] sm:$0xff] %v2412_v13  ;;  %3324 = vst [vmem:[#allocation132_spill] sm:$0xff] %v2414_v9  ;;  %v2416_v16 = vld [vmem:[#allocation9 + $0x1a0] sm:$0xff]  ;;  %v2418_v12 = vld [vmem:[#allocation9 + $0x1a8] sm:$0xff] }
  0x95   :  { %3325 = vst [vmem:[#allocation133_spill] sm:$0xff] %v2416_v16  ;;  %3326 = vst [vmem:[#allocation134_spill] sm:$0xff] %v2418_v12  ;;  %v2420_v7 = vld [vmem:[#allocation9 + $0x1b0] sm:$0xff]  ;;  %v2422_v3 = vld [vmem:[#allocation9 + $0x1b8] sm:$0xff] }
  0x96   :  { %3327 = vst [vmem:[#allocation135_spill] sm:$0xff] %v2420_v7  ;;  %3328 = vst [vmem:[#allocation136_spill] sm:$0xff] %v2422_v3  ;;  %v2424_v14 = vld [vmem:[#allocation9 + $0x1c0] sm:$0xff]  ;;  %v2426_v10 = vld [vmem:[#allocation9 + $0x1c8] sm:$0xff] }
  0x97   :  { %3329 = vst [vmem:[#allocation137_spill] sm:$0xff] %v2424_v14  ;;  %3330 = vst [vmem:[#allocation138_spill] sm:$0xff] %v2426_v10  ;;  %v2428_v5 = vld [vmem:[#allocation9 + $0x1d0] sm:$0xff]  ;;  %v2430_v1 = vld [vmem:[#allocation9 + $0x1d8] sm:$0xff] }
  0x98   :  { %3331 = vst [vmem:[#allocation139_spill] sm:$0xff] %v2428_v5  ;;  %3332 = vst [vmem:[#allocation140_spill] sm:$0xff] %v2430_v1  ;;  %v2432_v8 = vld [vmem:[#allocation9 + $0x1e0] sm:$0xff]  ;;  %v2434_v4 = vld [vmem:[#allocation9 + $0x1e8] sm:$0xff] }
  0x99   :  { %3333 = vst [vmem:[#allocation141_spill] sm:$0xff] %v2432_v8  ;;  %3334 = vst [vmem:[#allocation142_spill] sm:$0xff] %v2434_v4  ;;  %v2436_v6 = vld [vmem:[#allocation9 + $0x1f0] sm:$0xff]  ;;  %v2438_v2 = vld [vmem:[#allocation9 + $0x1f8] sm:$0xff] }
  0x9a   :  { %3335 = vst [vmem:[#allocation143_spill] sm:$0xff] %v2436_v6  ;;  %3336 = vst [vmem:[#allocation144_spill] sm:$0xff] %v2438_v2  ;;  %v2440_v13 = vld [vmem:[#allocation9 + $0x200] sm:$0xff]  ;;  %v2442_v7 = vld [vmem:[#allocation9 + $0x208] sm:$0xff] }
  0x9b   :  { %3337 = vst [vmem:[#allocation145_spill] sm:$0xff] %v2440_v13  ;;  %3338 = vst [vmem:[#allocation146_spill] sm:$0xff] %v2442_v7  ;;  %v2444_v16 = vld [vmem:[#allocation9 + $0x210] sm:$0xff]  ;;  %v2446_v14 = vld [vmem:[#allocation9 + $0x218] sm:$0xff] }
  0x9c   :  { %3339 = vst [vmem:[#allocation147_spill] sm:$0xff] %v2444_v16  ;;  %3340 = vst [vmem:[#allocation148_spill] sm:$0xff] %v2446_v14  ;;  %v2448_v10 = vld [vmem:[#allocation9 + $0x220] sm:$0xff]  ;;  %v2450_v5 = vld [vmem:[#allocation9 + $0x228] sm:$0xff] }
  0x9d   :  { %3341 = vst [vmem:[#allocation149_spill] sm:$0xff] %v2448_v10  ;;  %3342 = vst [vmem:[#allocation150_spill] sm:$0xff] %v2450_v5  ;;  %v2452_v1 = vld [vmem:[#allocation9 + $0x230] sm:$0xff]  ;;  %v2454_v8 = vld [vmem:[#allocation9 + $0x238] sm:$0xff] }
  0x9e   :  { %3343 = vst [vmem:[#allocation151_spill] sm:$0xff] %v2452_v1  ;;  %3344 = vst [vmem:[#allocation152_spill] sm:$0xff] %v2454_v8  ;;  %v2456_v4 = vld [vmem:[#allocation9 + $0x240] sm:$0xff]  ;;  %v2458_v6 = vld [vmem:[#allocation9 + $0x248] sm:$0xff] }
  0x9f   :  { %3345 = vst [vmem:[#allocation153_spill] sm:$0xff] %v2456_v4  ;;  %3346 = vst [vmem:[#allocation154_spill] sm:$0xff] %v2458_v6  ;;  %v2460_v2 = vld [vmem:[#allocation9 + $0x250] sm:$0xff]  ;;  %v2462_v13 = vld [vmem:[#allocation9 + $0x258] sm:$0xff] }
  0xa0   :  { %3347 = vst [vmem:[#allocation155_spill] sm:$0xff] %v2460_v2  ;;  %3348 = vst [vmem:[#allocation156_spill] sm:$0xff] %v2462_v13  ;;  %v2464_v7 = vld [vmem:[#allocation9 + $0x260] sm:$0xff]  ;;  %v2466_v16 = vld [vmem:[#allocation9 + $0x268] sm:$0xff] }
  0xa1   :  { %3349 = vst [vmem:[#allocation157_spill] sm:$0xff] %v2464_v7  ;;  %3350 = vst [vmem:[#allocation158_spill] sm:$0xff] %v2466_v16  ;;  %v2468_v14 = vld [vmem:[#allocation9 + $0x270] sm:$0xff]  ;;  %v2470_v10 = vld [vmem:[#allocation9 + $0x278] sm:$0xff] }
  0xa2   :  { %3351 = vst [vmem:[#allocation159_spill] sm:$0xff] %v2468_v14  ;;  %3352 = vst [vmem:[#allocation160_spill] sm:$0xff] %v2470_v10  ;;  %v2472_v5 = vld [vmem:[#allocation9 + $0x280] sm:$0xff]  ;;  %v2474_v1 = vld [vmem:[#allocation9 + $0x288] sm:$0xff] }
  0xa3   :  { %3353 = vst [vmem:[#allocation161_spill] sm:$0xff] %v2472_v5  ;;  %3354 = vst [vmem:[#allocation162_spill] sm:$0xff] %v2474_v1  ;;  %v2476_v8 = vld [vmem:[#allocation9 + $0x290] sm:$0xff]  ;;  %v2478_v4 = vld [vmem:[#allocation9 + $0x298] sm:$0xff] }
  0xa4   :  { %3355 = vst [vmem:[#allocation163_spill] sm:$0xff] %v2476_v8  ;;  %3356 = vst [vmem:[#allocation164_spill] sm:$0xff] %v2478_v4  ;;  %v2480_v6 = vld [vmem:[#allocation9 + $0x2a0] sm:$0xff]  ;;  %v2482_v2 = vld [vmem:[#allocation9 + $0x2a8] sm:$0xff] }
  0xa5   :  { %3357 = vst [vmem:[#allocation165_spill] sm:$0xff] %v2480_v6  ;;  %3358 = vst [vmem:[#allocation166_spill] sm:$0xff] %v2482_v2  ;;  %v2484_v13 = vld [vmem:[#allocation9 + $0x2b0] sm:$0xff]  ;;  %v2486_v7 = vld [vmem:[#allocation9 + $0x2b8] sm:$0xff] }
  0xa6   :  { %3359 = vst [vmem:[#allocation167_spill] sm:$0xff] %v2484_v13  ;;  %3360 = vst [vmem:[#allocation168_spill] sm:$0xff] %v2486_v7  ;;  %v2488_v16 = vld [vmem:[#allocation9 + $0x2c0] sm:$0xff]  ;;  %v2490_v14 = vld [vmem:[#allocation9 + $0x2c8] sm:$0xff] }
  0xa7   :  { %3361 = vst [vmem:[#allocation169_spill] sm:$0xff] %v2488_v16  ;;  %3362 = vst [vmem:[#allocation170_spill] sm:$0xff] %v2490_v14  ;;  %v2492_v10 = vld [vmem:[#allocation9 + $0x2d0] sm:$0xff]  ;;  %v2494_v5 = vld [vmem:[#allocation9 + $0x2d8] sm:$0xff] }
  0xa8   :  { %3363 = vst [vmem:[#allocation171_spill] sm:$0xff] %v2492_v10  ;;  %3364 = vst [vmem:[#allocation172_spill] sm:$0xff] %v2494_v5  ;;  %v2496_v1 = vld [vmem:[#allocation9 + $0x2e0] sm:$0xff]  ;;  %v2498_v8 = vld [vmem:[#allocation9 + $0x2e8] sm:$0xff] }
  0xa9   :  { %3365 = vst [vmem:[#allocation173_spill] sm:$0xff] %v2496_v1  ;;  %3366 = vst [vmem:[#allocation174_spill] sm:$0xff] %v2498_v8  ;;  %v2500_v4 = vld [vmem:[#allocation9 + $0x2f0] sm:$0xff]  ;;  %v2502_v6 = vld [vmem:[#allocation9 + $0x2f8] sm:$0xff] }
  0xaa   :  { %3367 = vst [vmem:[#allocation175_spill] sm:$0xff] %v2500_v4  ;;  %3368 = vst [vmem:[#allocation176_spill] sm:$0xff] %v2502_v6  ;;  %v2504_v2 = vld [vmem:[#allocation9 + $0x300] sm:$0xff]  ;;  %v2506_v13 = vld [vmem:[#allocation9 + $0x308] sm:$0xff] }
  0xab   :  { %3369 = vst [vmem:[#allocation177_spill] sm:$0xff] %v2504_v2  ;;  %3370 = vst [vmem:[#allocation178_spill] sm:$0xff] %v2506_v13  ;;  %v2508_v7 = vld [vmem:[#allocation9 + $0x310] sm:$0xff]  ;;  %v2510_v16 = vld [vmem:[#allocation9 + $0x318] sm:$0xff] }
  0xac   :  { %3371 = vst [vmem:[#allocation179_spill] sm:$0xff] %v2508_v7  ;;  %3372 = vst [vmem:[#allocation180_spill] sm:$0xff] %v2510_v16  ;;  %v2512_v14 = vld [vmem:[#allocation9 + $0x320] sm:$0xff]  ;;  %v2514_v10 = vld [vmem:[#allocation9 + $0x328] sm:$0xff] }
  0xad   :  { %3373 = vst [vmem:[#allocation181_spill] sm:$0xff] %v2512_v14  ;;  %3374 = vst [vmem:[#allocation182_spill] sm:$0xff] %v2514_v10  ;;  %v2516_v5 = vld [vmem:[#allocation9 + $0x330] sm:$0xff]  ;;  %v2518_v1 = vld [vmem:[#allocation9 + $0x338] sm:$0xff] }
  0xae   :  { %3375 = vst [vmem:[#allocation183_spill] sm:$0xff] %v2516_v5  ;;  %3376 = vst [vmem:[#allocation184_spill] sm:$0xff] %v2518_v1  ;;  %v2520_v8 = vld [vmem:[#allocation9 + $0x340] sm:$0xff]  ;;  %v2522_v4 = vld [vmem:[#allocation9 + $0x348] sm:$0xff] }
  0xaf   :  { %3377 = vst [vmem:[#allocation185_spill] sm:$0xff] %v2520_v8  ;;  %3378 = vst [vmem:[#allocation186_spill] sm:$0xff] %v2522_v4  ;;  %v2524_v6 = vld [vmem:[#allocation9 + $0x350] sm:$0xff]  ;;  %v2526_v2 = vld [vmem:[#allocation9 + $0x358] sm:$0xff] }
  0xb0   :  { %3379 = vst [vmem:[#allocation187_spill] sm:$0xff] %v2524_v6  ;;  %3380 = vst [vmem:[#allocation188_spill] sm:$0xff] %v2526_v2  ;;  %v2528_v13 = vld [vmem:[#allocation9 + $0x360] sm:$0xff]  ;;  %v2530_v7 = vld [vmem:[#allocation9 + $0x368] sm:$0xff] }
  0xb1   :  { %3381 = vst [vmem:[#allocation189_spill] sm:$0xff] %v2528_v13  ;;  %3382 = vst [vmem:[#allocation190_spill] sm:$0xff] %v2530_v7  ;;  %v2532_v16 = vld [vmem:[#allocation9 + $0x370] sm:$0xff]  ;;  %v2534_v14 = vld [vmem:[#allocation9 + $0x378] sm:$0xff] }
  0xb2   :  { %3383 = vst [vmem:[#allocation191_spill] sm:$0xff] %v2532_v16  ;;  %3384 = vst [vmem:[#allocation192_spill] sm:$0xff] %v2534_v14  ;;  %v2536_v10 = vld [vmem:[#allocation9 + $0x380] sm:$0xff]  ;;  %v2538_v5 = vld [vmem:[#allocation9 + $0x388] sm:$0xff] }
  0xb3   :  { %3385 = vst [vmem:[#allocation193_spill] sm:$0xff] %v2536_v10  ;;  %3386 = vst [vmem:[#allocation194_spill] sm:$0xff] %v2538_v5  ;;  %v2540_v1 = vld [vmem:[#allocation9 + $0x390] sm:$0xff]  ;;  %v2542_v8 = vld [vmem:[#allocation9 + $0x398] sm:$0xff] }
  0xb4   :  { %3387 = vst [vmem:[#allocation195_spill] sm:$0xff] %v2540_v1  ;;  %3388 = vst [vmem:[#allocation196_spill] sm:$0xff] %v2542_v8  ;;  %v2544_v4 = vld [vmem:[#allocation9 + $0x3a0] sm:$0xff]  ;;  %v2546_v6 = vld [vmem:[#allocation9 + $0x3a8] sm:$0xff] }
  0xb5   :  { %3389 = vst [vmem:[#allocation197_spill] sm:$0xff] %v2544_v4  ;;  %3390 = vst [vmem:[#allocation198_spill] sm:$0xff] %v2546_v6  ;;  %v2548_v2 = vld [vmem:[#allocation9 + $0x3b0] sm:$0xff]  ;;  %v2550_v13 = vld [vmem:[#allocation9 + $0x3b8] sm:$0xff] }
  0xb6   :  { %3391 = vst [vmem:[#allocation199_spill] sm:$0xff] %v2548_v2  ;;  %3392 = vst [vmem:[#allocation200_spill] sm:$0xff] %v2550_v13  ;;  %v2552_v7 = vld [vmem:[#allocation9 + $0x3c0] sm:$0xff]  ;;  %v2554_v16 = vld [vmem:[#allocation9 + $0x3c8] sm:$0xff] }
  0xb7   :  { %3393 = vst [vmem:[#allocation201_spill] sm:$0xff] %v2552_v7  ;;  %3394 = vst [vmem:[#allocation202_spill] sm:$0xff] %v2554_v16  ;;  %v2556_v14 = vld [vmem:[#allocation9 + $0x3d0] sm:$0xff]  ;;  %v2558_v10 = vld [vmem:[#allocation9 + $0x3d8] sm:$0xff] }
  0xb8   :  { %3395 = vst [vmem:[#allocation203_spill] sm:$0xff] %v2556_v14  ;;  %3396 = vst [vmem:[#allocation204_spill] sm:$0xff] %v2558_v10  ;;  %v2560_v5 = vld [vmem:[#allocation9 + $0x3e0] sm:$0xff]  ;;  %v2562_v1 = vld [vmem:[#allocation9 + $0x3e8] sm:$0xff] }
  0xb9   :  { %3397 = vst [vmem:[#allocation205_spill] sm:$0xff] %v2560_v5  ;;  %3398 = vst [vmem:[#allocation206_spill] sm:$0xff] %v2562_v1  ;;  %v2564_v8 = vld [vmem:[#allocation9 + $0x3f0] sm:$0xff]  ;;  %v2566_v4 = vld [vmem:[#allocation9 + $0x3f8] sm:$0xff] }
  0xba   :  { %3399 = vst [vmem:[#allocation207_spill] sm:$0xff] %v2564_v8  ;;  %3400 = vst [vmem:[#allocation208_spill] sm:$0xff] %v2566_v4  ;;  %v107_v6 = vld [vmem:[#allocation6 + $0x8] sm:$0xff]  ;;  %v106_v22 = vld [vmem:[#allocation6] sm:$0xff]  ;;  %v3401_v8 = vmov 0.0  }
  0xbb   :  { %v111_v2 = vld [vmem:[#allocation6 + $0x28] sm:$0xff]  ;;  %v110_v3 = vld [vmem:[#allocation6 + $0x20] sm:$0xff]  ;;  %v109_v7 = vld [vmem:[#allocation6 + $0x18] sm:$0xff] }
  0xbc   :  { %v1398_v13 = vpack.c.bf16 %v111_v2, %v107_v6  ;;  %v1400_v9 = vpack.c.bf16 %v110_v3, %v106_v22  ;;  %v113_v16 = vld [vmem:[#allocation6 + $0x38] sm:$0xff]  ;;  %v108_v15 = vld [vmem:[#allocation6 + $0x10] sm:$0xff]  ;;  %v98_v5 = vld [vmem:[#allocation3] sm:$0xff] }
  0xbd   :  { %v112_v14 = vld [vmem:[#allocation6 + $0x30] sm:$0xff]  ;;  %v1402_v10 = vpack.c.bf16 %v113_v16, %v109_v7  ;;  %v99_v4 = vld [vmem:[#allocation3 + $0x8] sm:$0xff]  ;;  %v101_v3 = vld [vmem:[#allocation3 + $0x18] sm:$0xff] }
  0xbe   :  { %1399 = vmatprep.subr.bf16.mxu0 %v1398_v13  ;;  %v1404_v21 = vpack.c.bf16 %v112_v14, %v108_v15  ;;  %v100_v2 = vld [vmem:[#allocation3 + $0x10] sm:$0xff]  ;;  %v105_v7 = vld [vmem:[#allocation3 + $0x38] sm:$0xff]  ;;  %v611_v14 = vld [vmem:[%s3180_s5] sm:$0xf] }
  0xbf   :  { %1401 = vmatpush1.bf16.msra.mxu0 %v1400_v9  ;;  %1403 = vmatprep.subr.bf16.mxu1 %v1402_v10  ;;  %v104_v6 = vld [vmem:[#allocation3 + $0x30] sm:$0xff]  ;;  %v116_v9 = vlaneseq }
  0xc0   :  { %1405 = vmatpush1.bf16.msra.mxu1 %v1404_v21 }
  0xc1   :  { %v117_v10 = vshrl.u32 %v116_v9, 7 }
  0xc2   :  { %1313 = vmatmul.mubr.msk.f32.vlgmr.msra.gmra.mrb[0].mxu0 %vm136_vm0, %v98_v5 }
  0xc3   :  { %231 = vmatprep.mubr.f32.mxu0 %v3401_v8  ;;  %1321 = vmatmul.mubr.msk.f32.vlgmr.msra.gmra.mrb[0].mxu1 %vm136_vm0, %v98_v5  ;;  %v102_v5 = vld [vmem:[#allocation3 + $0x20] sm:$0xff]  ;;  %v118_v13 = vsub.s32 0, %v117_v10  ;;  %v122_v16 = vsub.s32 1, %v117_v10  ;;  %v126_v22 = vsub.s32 2, %v117_v10 }
  0xc4   :  { %344 = vmatprep.mubr.f32.mxu1 %v3401_v8 }
  0xc5   :  { %v2601_v15 = vrot.slane %v611_v14, %v118_v13  ;;  %v2603_v21 = vrot.slane %v611_v14, %v122_v16 }
  0xc6   :  { %1314 = vmatmul.mubr.msk.f32.gmra.mrb[2].mxu0 %vm136_vm0, %v99_v4 }
  0xc7   :  { %237 = vmatprep.mubr.f32.mxu0 %v3401_v8  ;;  %1322 = vmatmul.mubr.msk.f32.gmra.mrb[2].mxu1 %vm136_vm0, %v99_v4  ;;  %v103_v4 = vld [vmem:[#allocation3 + $0x28] sm:$0xff]  ;;  %3402 = vst [vmem:[#allocation209_spill] sm:$0xff] %v2601_v15  ;;  %3403 = vst [vmem:[#allocation210_spill] sm:$0xff] %v2603_v21 }
  0xc8   :  { %350 = vmatprep.mubr.f32.mxu1 %v3401_v8 }
  0xca   :  { %1315 = vmatmul.mubr.msk.f32.gmra.mrb[4].mxu0 %vm136_vm0, %v100_v2 }
  0xcb   :  { %243 = vmatprep.mubr.f32.mxu0 %v3401_v8  ;;  %1323 = vmatmul.mubr.msk.f32.gmra.mrb[4].mxu1 %vm136_vm0, %v100_v2  ;;  %v2605_v2 = vrot.slane %v611_v14, %v126_v22 }
  0xcc   :  { %356 = vmatprep.mubr.f32.mxu1 %v3401_v8 }
  0xcd   :  { %3404 = vst [vmem:[#allocation211_spill] sm:$0xff] %v2605_v2 }
  0xce   :  { %1316 = vmatmul.mubr.msk.f32.gmra.mrb[6].mxu0 %vm136_vm0, %v101_v3 }
  0xcf   :  { %249 = vmatprep.mubr.f32.mxu0 %v3401_v8  ;;  %1324 = vmatmul.mubr.msk.f32.gmra.mrb[6].mxu1 %vm136_vm0, %v101_v3 }
  0xd0   :  { %362 = vmatprep.mubr.f32.mxu1 %v3401_v8 }
  0xd2   :  { %1317 = vmatmul.mubr.msk.f32.gmra.mrb[8].mxu0 %vm136_vm0, %v102_v5 }
  0xd3   :  { %255 = vmatprep.mubr.f32.mxu0 %v3401_v8  ;;  %1325 = vmatmul.mubr.msk.f32.gmra.mrb[8].mxu1 %vm136_vm0, %v102_v5  ;;  %v114_v5 = vld [vmem:[%s3178_s3] sm:$0xf]  ;;  %s2660_s3 = smov 1  }
  0xd4   :  { %368 = vmatprep.mubr.f32.mxu1 %v3401_v8 }
  0xd6   :  { %1318 = vmatmul.mubr.msk.f32.gmra.mrb[10].mxu0 %vm136_vm0, %v103_v4 }
  0xd7   :  { %261 = vmatprep.mubr.f32.mxu0 %v3401_v8  ;;  %1326 = vmatmul.mubr.msk.f32.gmra.mrb[10].mxu1 %vm136_vm0, %v103_v4  ;;  %v2612_v4 = vrot.slane %v114_v5, %v118_v13 }
  0xd8   :  { %374 = vmatprep.mubr.f32.mxu1 %v3401_v8 }
  0xda   :  { %1319 = vmatmul.mubr.msk.f32.gmra.mrb[12].mxu0 %vm136_vm0, %v104_v6 }
  0xdb   :  { %267 = vmatprep.mubr.f32.mxu0 %v3401_v8  ;;  %1327 = vmatmul.mubr.msk.f32.gmra.mrb[12].mxu1 %vm136_vm0, %v104_v6  ;;  %v2614_v6 = vrot.slane %v114_v5, %v122_v16 }
  0xdc   :  { %380 = vmatprep.mubr.f32.mxu1 %v3401_v8  ;;  %v130_v8 = vsub.s32 3, %v117_v10 }
  0xde   :  { %1320 = vmatmul.mubr.msk.f32.gmra.mrb[14].mxu0 %vm136_vm0, %v105_v7  ;;  %v2607_v3 = vrot.slane %v611_v14, %v130_v8  ;;  %v2618_v15 = vrot.slane %v114_v5, %v130_v8 }
  0xdf   :  { %1328 = vmatmul.mubr.msk.f32.gmra.mrb[14].mxu1 %vm136_vm0, %v105_v7  ;;  %v2616_v7 = vrot.slane %v114_v5, %v126_v22 }
  0xe0   :  { %3405 = vst [vmem:[#allocation212_spill] sm:$0xff] %v2607_v3 }
 0x195   :  { %v227_v9 = vpop.f32.mrb[0].mxu0 }
 0x196   :  { %v228_v21 = vadd.f32 %v227_v9, %v2612_v4  ;;  %v229_v1 = vpop.f32.mrb[1].mxu0  ;;  %v340_v14 = vpop.f32.mrb[0].mxu1 }
 0x197   :  { %v230_v10 = vadd.f32 %v229_v1, %v2614_v6  ;;  %v341_v3 = vadd.f32 %v340_v14, %v2616_v7  ;;  %v342_v12 = vpop.f32.mrb[1].mxu1 }
 0x198   :  { %387 = vst [vmem:[#allocation2] sm:$0xff] %v228_v21  ;;  %v1329_v2 = vmul.f32 -1.442695, %v228_v21  ;;  %v343_v16 = vadd.f32 %v342_v12, %v2618_v15 }
 0x199   :  { %388 = vst [vmem:[#allocation2 + $0x8] sm:$0xff] %v230_v10  ;;  %v1330_v13 = vmul.f32 -1.442695, %v230_v10  ;;  %v233_v22 = vpop.f32.mrb[2].mxu0  ;;  %389 = vst [vmem:[#allocation2 + $0x10] sm:$0xff] %v341_v3 }
 0x19a   :  { %1804 = vpow2.f32 %v1329_v2  ;;  %v234_v8 = vadd.f32 %v233_v22, %v2612_v4  ;;  %v235_v5 = vpop.f32.mrb[3].mxu0  ;;  %390 = vst [vmem:[#allocation2 + $0x18] sm:$0xff] %v343_v16  ;;  %v346_v9 = vpop.f32.mrb[2].mxu1 }
 0x19b   :  { %1806 = vpow2.f32 %v1330_v13  ;;  %v236_v1 = vadd.f32 %v235_v5, %v2614_v6  ;;  %v347_v21 = vadd.f32 %v346_v9, %v2616_v7  ;;  %v348_v14 = vpop.f32.mrb[3].mxu1 }
 0x19c   :  { %391 = vst [vmem:[#allocation2 + $0x20] sm:$0xff] %v234_v8  ;;  %v349_v10 = vadd.f32 %v348_v14, %v2618_v15  ;;  %v1331_v8 = vmul.f32 -1.442695, %v343_v16 }
 0x19d   :  { %392 = vst [vmem:[#allocation2 + $0x28] sm:$0xff] %v236_v1  ;;  %v239_v18 = vpop.f32.mrb[4].mxu0  ;;  %393 = vst [vmem:[#allocation2 + $0x30] sm:$0xff] %v347_v21 }
 0x19e   :  { %v240_v12 = vadd.f32 %v239_v18, %v2612_v4  ;;  %v241_v2 = vpop.f32.mrb[5].mxu0  ;;  %394 = vst [vmem:[#allocation2 + $0x38] sm:$0xff] %v349_v10  ;;  %v352_v22 = vpop.f32.mrb[4].mxu1  ;;  %1808 = vpow2.f32 %v1331_v8 }
 0x19f   :  { %v242_v13 = vadd.f32 %v241_v2, %v2614_v6  ;;  %v353_v24 = vadd.f32 %v352_v22, %v2616_v7  ;;  %v354_v5 = vpop.f32.mrb[5].mxu1  ;;  %1810 = vtanh.f32 %v341_v3 }
 0x1a0   :  { %395 = vst [vmem:[#allocation2 + $0x40] sm:$0xff] %v240_v12  ;;  %v355_v9 = vadd.f32 %v354_v5, %v2618_v15 }
 0x1a1   :  { %396 = vst [vmem:[#allocation2 + $0x48] sm:$0xff] %v242_v13  ;;  %v245_v1 = vpop.f32.mrb[6].mxu0  ;;  %397 = vst [vmem:[#allocation2 + $0x50] sm:$0xff] %v353_v24 }
 0x1a2   :  { %v246_v14 = vadd.f32 %v245_v1, %v2612_v4  ;;  %v247_v21 = vpop.f32.mrb[7].mxu0  ;;  %398 = vst [vmem:[#allocation2 + $0x58] sm:$0xff] %v355_v9  ;;  %v358_v18 = vpop.f32.mrb[6].mxu1 }
 0x1a3   :  { %v248_v10 = vadd.f32 %v247_v21, %v2614_v6  ;;  %v359_v12 = vadd.f32 %v358_v18, %v2616_v7  ;;  %v360_v2 = vpop.f32.mrb[7].mxu1 }
 0x1a4   :  { %v1805_v30 = vpop.eup %1804  ;;  %399 = vst [vmem:[#allocation2 + $0x60] sm:$0xff] %v246_v14  ;;  %v361_v16 = vadd.f32 %v360_v2, %v2618_v15 }
 0x1a5   :  { %v1807_v22 = vpop.eup %1806  ;;  %v640_v11 = vadd.f32 1.0, %v1805_v30  ;;  %400 = vst [vmem:[#allocation2 + $0x68] sm:$0xff] %v248_v10  ;;  %v251_v13 = vpop.f32.mrb[8].mxu0  ;;  %401 = vst [vmem:[#allocation2 + $0x70] sm:$0xff] %v359_v12 }
 0x1a6   :  { %v646_v24 = vadd.f32 1.0, %v1807_v22  ;;  %v252_v5 = vadd.f32 %v251_v13, %v2612_v4  ;;  %v253_v9 = vpop.f32.mrb[9].mxu0  ;;  %402 = vst [vmem:[#allocation2 + $0x78] sm:$0xff] %v361_v16  ;;  %v364_v1 = vpop.f32.mrb[8].mxu1 }
 0x1a7   :  { %1812 = vrcp.f32 %v640_v11  ;;  %v254_v14 = vadd.f32 %v253_v9, %v2614_v6  ;;  %v365_v30 = vadd.f32 %v364_v1, %v2616_v7  ;;  %v366_v8 = vpop.f32.mrb[9].mxu1 }
 0x1a8   :  { %1814 = vrcp.f32 %v646_v24  ;;  %403 = vst [vmem:[#allocation2 + $0x80] sm:$0xff] %v252_v5  ;;  %v367_v21 = vadd.f32 %v366_v8, %v2618_v15  ;;  %v1809_v9 = vpop.eup %1808 }
 0x1a9   :  { %404 = vst [vmem:[#allocation2 + $0x88] sm:$0xff] %v254_v14  ;;  %v257_v18 = vpop.f32.mrb[10].mxu0  ;;  %405 = vst [vmem:[#allocation2 + $0x90] sm:$0xff] %v365_v30  ;;  %v1811_v30 = vpop.eup %1810 }
 0x1aa   :  { %v258_v3 = vadd.f32 %v257_v18, %v2612_v4  ;;  %v259_v10 = vpop.f32.mrb[11].mxu0  ;;  %406 = vst [vmem:[#allocation2 + $0x98] sm:$0xff] %v367_v21  ;;  %v370_v12 = vpop.f32.mrb[10].mxu1 }
 0x1ab   :  { %v260_v11 = vadd.f32 %v259_v10, %v2614_v6  ;;  %v371_v2 = vadd.f32 %v370_v12, %v2616_v7  ;;  %v372_v22 = vpop.f32.mrb[11].mxu1 }
 0x1ac   :  { %407 = vst [vmem:[#allocation2 + $0xa0] sm:$0xff] %v258_v3  ;;  %v373_v16 = vadd.f32 %v372_v22, %v2618_v15 }
 0x1ad   :  { %408 = vst [vmem:[#allocation2 + $0xa8] sm:$0xff] %v260_v11  ;;  %v263_v13 = vpop.f32.mrb[12].mxu0  ;;  %409 = vst [vmem:[#allocation2 + $0xb0] sm:$0xff] %v371_v2  ;;  %v653_v2 = vadd.f32 1.0, %v1809_v9 }
 0x1ae   :  { %v264_v24 = vadd.f32 %v263_v13, %v2612_v4  ;;  %v265_v5 = vpop.f32.mrb[13].mxu0  ;;  %410 = vst [vmem:[#allocation2 + $0xb8] sm:$0xff] %v373_v16  ;;  %v376_v1 = vpop.f32.mrb[12].mxu1 }
 0x1af   :  { %v266_v14 = vadd.f32 %v265_v5, %v2614_v6  ;;  %v377_v8 = vadd.f32 %v376_v1, %v2616_v7  ;;  %v378_v21 = vpop.f32.mrb[13].mxu1  ;;  %1816 = vrcp.f32 %v653_v2 }
 0x1b0   :  { %411 = vst [vmem:[#allocation2 + $0xc0] sm:$0xff] %v264_v24  ;;  %v379_v3 = vadd.f32 %v378_v21, %v2618_v15 }
 0x1b1   :  { %v1813_v18 = vpop.eup %1812  ;;  %412 = vst [vmem:[#allocation2 + $0xc8] sm:$0xff] %v266_v14  ;;  %v269_v10 = vpop.f32.mrb[14].mxu0  ;;  %413 = vst [vmem:[#allocation2 + $0xd0] sm:$0xff] %v377_v8  ;;  %v2652_v8 = vmov 0.0  }
 0x1b2   :  { %v1815_v12 = vpop.eup %1814  ;;  %v657_v11 = vmul.f32 %v1813_v18, %v1811_v30  ;;  %v270_v22 = vadd.f32 %v269_v10, %v2612_v4  ;;  %v271_v16 = vpop.f32.mrb[15].mxu0  ;;  %414 = vst [vmem:[#allocation2 + $0xd8] sm:$0xff] %v379_v3  ;;  %v2654_v18 = vmov 0.0  }
 0x1b3   :  { %v656_v13 = vmul.f32 0.0, %v1815_v12  ;;  %v382_v5 = vpop.f32.mrb[14].mxu1  ;;  %v272_v24 = vadd.f32 %v271_v16, %v2614_v6 }
 0x1b4   :  { %415 = vst [vmem:[#allocation2 + $0xe0] sm:$0xff] %v270_v22  ;;  %v383_v1 = vadd.f32 %v382_v5, %v2616_v7  ;;  %v384_v17 = vpop.f32.mrb[15].mxu1 }
 0x1b5   :  { %v658_v14 = vadd.f32 %v657_v11, %v656_v13   ;;  %416 = vst [vmem:[#allocation2 + $0xe8] sm:$0xff] %v272_v24  ;;  %v385_v21 = vadd.f32 %v384_v17, %v2618_v15 }
 0x1b6   :  { %417 = vst [vmem:[#allocation2 + $0xf0] sm:$0xff] %v383_v1 }
 0x1b7   :  { %1818 = vtanh.f32 %v658_v14  ;;  %418 = vst [vmem:[#allocation2 + $0xf8] sm:$0xff] %v385_v21 }
 0x1b9   :  { %v1817_v9 = vpop.eup %1816 }
 0x1c1   :  { %v1819_v4 = vpop.eup %1818 }
 0x1c2   :  { %v660_v30 = vmul.f32 %v1819_v4, %v1817_v9  }
 0x1c3 LB: > { %v3406_v55 = vld [vmem:[#allocation82_spill] sm:$0xff]  ;;  %v3408_v51 = vld [vmem:[#allocation81_spill] sm:$0xff]  ;;  %v3412_v57 = vld [vmem:[#allocation84_spill] sm:$0xff]  ;;  %735 = vmatprep.mubr.f32.mxu0 %v2034_v18  ;;  %806 = vmatprep.mubr.f32.mxu1 %v2034_v18  ;;  %s1335_s5 = sshll.u32 %s2046_s3, 3  ;;  %s666_s3 = sadd.s32 1, %s2046_s3   ;;  %s2046_s3 = sphi %s2660_s3, %s666_s3   ;;  %v2042_v30 = vphi %v660_v30, %v3629_v30   ;;  %v2038_v14 = vphi %v658_v14, %v1014_v14   ;;  %v2034_v18 = vphi %v2654_v18, %v3628_v18   ;;  %v2030_v8 = vphi %v2652_v8, %v3627_v8  }
 0x1c4   : > { %v3407_v59 = vld [vmem:[#allocation86_spill] sm:$0xff]  ;;  %v3409_v58 = vld [vmem:[#allocation85_spill] sm:$0xff]  ;;  %v3413_v61 = vld [vmem:[#allocation88_spill] sm:$0xff]  ;;  %s838_s25 = sshra.s32 %s1335_s5, 3  ;;  %p663_p12 = scmp.ge.s32.totalorder %s666_s3, 8  }
 0x1c5   : > { %v2677_v17 = vpack.c.bf16 %v3407_v59, %v3406_v55  ;;  %v2681_v15 = vpack.c.bf16 %v3409_v58, %v3408_v51  ;;  %v3410_v63 = vld [vmem:[#allocation90_spill] sm:$0xff]  ;;  %v2690_v7 = vpack.c.bf16 %v3413_v61, %v3412_v57  ;;  %v3414_v53 = vld [vmem:[#allocation83_spill] sm:$0xff]  ;;  %v3416_v62 = vld [vmem:[#allocation89_spill] sm:$0xff]  ;;  %s1345_s26 = sshll.u32 %s838_s25, 5  ;;  %vm2060_vm1 = vmmov (%p663_p12), 0   ;;  %s2061_s1 = smov (%p663_p12), [#allocation12]  }
 0x1c6   : > { %v3411_v52 = vld [vmem:[#allocation94_spill] sm:$0xff]  ;;  %v3415_v60 = vld [vmem:[#allocation87_spill] sm:$0xff]  ;;  %v3417_v56 = vld [vmem:[#allocation93_spill] sm:$0xff]  ;;  %s842_s27 = scalar_lea.vmem [#allocation2], %s1345_s26  ;;  %s1283_s28 = sshll.u32 (%p663_p12), %s2061_s1, 4  ;;  %s1284_s28 = int_to_ptr.vmem [resolvable:$true] %s1283_s28 }
 0x1c7   : > { %v2685_v6 = vpack.c.bf16 %v3411_v52, %v3410_v63  ;;  %1407 = vmatprep.subr.bf16.mxu0 %v2677_v17  ;;  %v2694_v3 = vpack.c.bf16 %v3415_v60, %v3414_v53  ;;  %v2699_v10 = vpack.c.bf16 %v3417_v56, %v3416_v62  ;;  %v3418_v49 = vld [vmem:[#allocation92_spill] sm:$0xff]  ;;  %v3420_v50 = vld [vmem:[#allocation98_spill] sm:$0xff]  ;;  %1471 = vmatprep.subr.bf16.mxu1 %v2690_v7  ;;  %v3422_v0 = vld [vmem:[#allocation91_spill] sm:$0xff]  ;;  %s1978_s9 = scalar_lea.vmem (%p663_p12), %s1284_s28, 128  ;;  %p1983_p0 = scmp.lt.s32.totalorder (%p663_p12), %s1284_s28, %s1284_s28 }
 0x1c8   : > { %1409 = vmatpush1.bf16.msra.mxu0 %v2681_v15  ;;  %v3419_v43 = vld [vmem:[#allocation96_spill] sm:$0xff]  ;;  %v3421_v44 = vld [vmem:[#allocation102_spill] sm:$0xff]  ;;  %v3423_v47 = vld [vmem:[#allocation95_spill] sm:$0xff]  ;;  %p1979_p13 = scmp.ne.s32.totalorder (%p663_p12), %s1284_s28, %s1978_s9  ;;  %p1984_p1 = scmp.lt.s32.totalorder (%p663_p12), %s1978_s9, %s1978_s9 }
 0x1c9   : > { %v2703_v12 = vpack.c.bf16 %v3419_v43, %v3418_v49  ;;  %1411 = vmatprep.subr.bf16.mxu0 %v2685_v6  ;;  %v2708_v11 = vpack.c.bf16 %v3421_v44, %v3420_v50  ;;  %1473 = vmatpush1.bf16.msra.mxu1 %v2694_v3  ;;  %v2714_v2 = vpack.c.bf16 %v3423_v47, %v3422_v0  ;;  %v3424_v41 = vld [vmem:[#allocation100_spill] sm:$0xff]  ;;  %v3426_v54 = vld [vmem:[#allocation97_spill] sm:$0xff]  ;;  %v3428_v42 = vld [vmem:[#allocation106_spill] sm:$0xff] }
 0x1ca   : > { %v3425_v35 = vld [vmem:[#allocation104_spill] sm:$0xff]  ;;  %v3427_v48 = vld [vmem:[#allocation101_spill] sm:$0xff]  ;;  %v3429_v36 = vld [vmem:[#allocation110_spill] sm:$0xff]  ;;  %p1985_p2 = por (%p663_p12), %p1984_p1, %p1983_p0 }
 0x1cb   : > { %1475 = vmatprep.subr.bf16.mxu1 %v2703_v12  ;;  %v2719_v22 = vpack.c.bf16 %v3425_v35, %v3424_v41  ;;  %v2724_v16 = vpack.c.bf16 %v3427_v48, %v3426_v54  ;;  %v2729_v13 = vpack.c.bf16 %v3429_v36, %v3428_v42  ;;  %v3430_v45 = vld [vmem:[#allocation99_spill] sm:$0xff]  ;;  %v3432_v33 = vld [vmem:[#allocation108_spill] sm:$0xff]  ;;  %v3434_v46 = vld [vmem:[#allocation105_spill] sm:$0xff] }
 0x1cc   : > { %1413 = vmatpush1.bf16.msra.mxu0 %v2699_v10  ;;  %v3431_v39 = vld [vmem:[#allocation103_spill] sm:$0xff]  ;;  %v3433_v27 = vld [vmem:[#allocation112_spill] sm:$0xff]  ;;  %v3435_v40 = vld [vmem:[#allocation109_spill] sm:$0xff]  ;;  %p1986_p3 = pnand (%p663_p12), %p1985_p2, %p1979_p13 }
 0x1cd   : > { %1415 = vmatprep.subr.bf16.mxu0 %v2708_v11  ;;  %1477 = vmatpush1.bf16.msra.mxu1 %v2714_v2  ;;  %v2734_v5 = vpack.c.bf16 %v3431_v39, %v3430_v45  ;;  %v2739_v24 = vpack.c.bf16 %v3433_v27, %v3432_v33  ;;  %v2744_v1 = vpack.c.bf16 %v3435_v40, %v3434_v46  ;;  %v3436_v34 = vld [vmem:[#allocation114_spill] sm:$0xff]  ;;  %v3438_v37 = vld [vmem:[#allocation107_spill] sm:$0xff]  ;;  %v3440_v25 = vld [vmem:[#allocation116_spill] sm:$0xff] }
 0x1ce   : > { %1479 = vmatprep.subr.bf16.mxu1 %v2719_v22  ;;  %v3437_v28 = vld [vmem:[#allocation118_spill] sm:$0xff]  ;;  %v3439_v31 = vld [vmem:[#allocation111_spill] sm:$0xff]  ;;  %v3441_v19 = vld [vmem:[#allocation120_spill] sm:$0xff] }
 0x1cf   : > { %v2749_v21 = vpack.c.bf16 %v3437_v28, %v3436_v34  ;;  %v2754_v9 = vpack.c.bf16 %v3439_v31, %v3438_v37  ;;  %v2759_v4 = vpack.c.bf16 %v3441_v19, %v3440_v25  ;;  %v3442_v38 = vld [vmem:[#allocation113_spill] sm:$0xff]  ;;  %v3444_v26 = vld [vmem:[#allocation122_spill] sm:$0xff]  ;;  %v3446_v29 = vld [vmem:[#allocation115_spill] sm:$0xff] }
 0x1d0   : > { %1417 = vmatpush1.bf16.msra.mxu0 %v2724_v16  ;;  %v3443_v32 = vld [vmem:[#allocation117_spill] sm:$0xff]  ;;  %v3445_v20 = vld [vmem:[#allocation126_spill] sm:$0xff]  ;;  %v3447_v23 = vld [vmem:[#allocation119_spill] sm:$0xff] }
 0x1d1   : > { %1419 = vmatprep.subr.bf16.mxu0 %v2729_v13  ;;  %1481 = vmatpush1.bf16.msra.mxu1 %v2734_v5  ;;  %v2764_v0 = vpack.c.bf16 %v3443_v32, %v3442_v38  ;;  %v2769_v27 = vpack.c.bf16 %v3445_v20, %v3444_v26  ;;  %v2774_v19 = vpack.c.bf16 %v3447_v23, %v3446_v29  ;;  %v3448_v25 = vld [vmem:[#allocation124_spill] sm:$0xff]  ;;  %v3450_v32 = vld [vmem:[#allocation121_spill] sm:$0xff]  ;;  %v3452_v18 = vld [vmem:[#allocation130_spill] sm:$0xff] }
 0x1d2   : > { %1483 = vmatprep.subr.bf16.mxu1 %v2739_v24  ;;  %v3449_v28 = vld [vmem:[#allocation128_spill] sm:$0xff]  ;;  %v3451_v33 = vld [vmem:[#allocation125_spill] sm:$0xff]  ;;  %v3453_v20 = vld [vmem:[#allocation134_spill] sm:$0xff] }
 0x1d3   : > { %v2779_v31 = vpack.c.bf16 %v3449_v28, %v3448_v25  ;;  %v2784_v34 = vpack.c.bf16 %v3451_v33, %v3450_v32  ;;  %v2789_v26 = vpack.c.bf16 %v3453_v20, %v3452_v18  ;;  %v3454_v23 = vld [vmem:[#allocation123_spill] sm:$0xff]  ;;  %v3456_v25 = vld [vmem:[#allocation132_spill] sm:$0xff]  ;;  %v3458_v32 = vld [vmem:[#allocation129_spill] sm:$0xff] }
 0x1d4   : > { %1421 = vmatpush1.bf16.msra.mxu0 %v2744_v1  ;;  %v3455_v29 = vld [vmem:[#allocation127_spill] sm:$0xff]  ;;  %v3457_v28 = vld [vmem:[#allocation136_spill] sm:$0xff]  ;;  %v3459_v33 = vld [vmem:[#allocation133_spill] sm:$0xff] }
 0x1d5   : > { %1423 = vmatprep.subr.bf16.mxu0 %v2749_v21  ;;  %1485 = vmatpush1.bf16.msra.mxu1 %v2754_v9  ;;  %v2794_v35 = vpack.c.bf16 %v3455_v29, %v3454_v23  ;;  %v2799_v36 = vpack.c.bf16 %v3457_v28, %v3456_v25  ;;  %v2804_v37 = vpack.c.bf16 %v3459_v33, %v3458_v32  ;;  %v3460_v20 = vld [vmem:[#allocation138_spill] sm:$0xff]  ;;  %v3462_v23 = vld [vmem:[#allocation131_spill] sm:$0xff]  ;;  %v3464_v25 = vld [vmem:[#allocation140_spill] sm:$0xff] }
 0x1d6   : > { %1487 = vmatprep.subr.bf16.mxu1 %v2759_v4  ;;  %v3461_v18 = vld [vmem:[#allocation142_spill] sm:$0xff]  ;;  %v3463_v29 = vld [vmem:[#allocation135_spill] sm:$0xff]  ;;  %v3465_v28 = vld [vmem:[#allocation144_spill] sm:$0xff] }
 0x1d7   : > { %v2809_v38 = vpack.c.bf16 %v3461_v18, %v3460_v20  ;;  %v2814_v39 = vpack.c.bf16 %v3463_v29, %v3462_v23  ;;  %v2819_v40 = vpack.c.bf16 %v3465_v28, %v3464_v25  ;;  %v3466_v32 = vld [vmem:[#allocation137_spill] sm:$0xff]  ;;  %v3468_v20 = vld [vmem:[#allocation146_spill] sm:$0xff]  ;;  %v3470_v23 = vld [vmem:[#allocation139_spill] sm:$0xff] }
 0x1d8   : > { %1425 = vmatpush1.bf16.msra.mxu0 %v2764_v0  ;;  %v3467_v33 = vld [vmem:[#allocation141_spill] sm:$0xff]  ;;  %v3469_v18 = vld [vmem:[#allocation150_spill] sm:$0xff]  ;;  %v3471_v29 = vld [vmem:[#allocation143_spill] sm:$0xff] }
 0x1d9   : > { %1427 = vmatprep.subr.bf16.mxu0 %v2769_v27  ;;  %1489 = vmatpush1.bf16.msra.mxu1 %v2774_v19  ;;  %v2824_v41 = vpack.c.bf16 %v3467_v33, %v3466_v32  ;;  %v2829_v42 = vpack.c.bf16 %v3469_v18, %v3468_v20  ;;  %v2834_v43 = vpack.c.bf16 %v3471_v29, %v3470_v23  ;;  %v3472_v25 = vld [vmem:[#allocation148_spill] sm:$0xff]  ;;  %v3474_v32 = vld [vmem:[#allocation145_spill] sm:$0xff]  ;;  %v3476_v20 = vld [vmem:[#allocation154_spill] sm:$0xff] }
 0x1da   : > { %1491 = vmatprep.subr.bf16.mxu1 %v2779_v31  ;;  %v3473_v28 = vld [vmem:[#allocation152_spill] sm:$0xff]  ;;  %v3475_v33 = vld [vmem:[#allocation149_spill] sm:$0xff]  ;;  %v3477_v18 = vld [vmem:[#allocation158_spill] sm:$0xff] }
 0x1db   : > { %v2839_v44 = vpack.c.bf16 %v3473_v28, %v3472_v25  ;;  %v2844_v45 = vpack.c.bf16 %v3475_v33, %v3474_v32  ;;  %v2849_v46 = vpack.c.bf16 %v3477_v18, %v3476_v20  ;;  %v3478_v23 = vld [vmem:[#allocation147_spill] sm:$0xff]  ;;  %v3480_v25 = vld [vmem:[#allocation156_spill] sm:$0xff]  ;;  %v3482_v32 = vld [vmem:[#allocation153_spill] sm:$0xff] }
 0x1dc   : > { %1429 = vmatpush1.bf16.msra.mxu0 %v2784_v34  ;;  %v3479_v29 = vld [vmem:[#allocation151_spill] sm:$0xff]  ;;  %v3481_v28 = vld [vmem:[#allocation160_spill] sm:$0xff]  ;;  %v3483_v33 = vld [vmem:[#allocation157_spill] sm:$0xff] }
 0x1dd   : > { %1431 = vmatprep.subr.bf16.mxu0 %v2789_v26  ;;  %1493 = vmatpush1.bf16.msra.mxu1 %v2794_v35  ;;  %v2854_v47 = vpack.c.bf16 %v3479_v29, %v3478_v23  ;;  %v2859_v48 = vpack.c.bf16 %v3481_v28, %v3480_v25  ;;  %v2864_v49 = vpack.c.bf16 %v3483_v33, %v3482_v32  ;;  %v3484_v20 = vld [vmem:[#allocation162_spill] sm:$0xff]  ;;  %v3486_v23 = vld [vmem:[#allocation155_spill] sm:$0xff]  ;;  %v3488_v25 = vld [vmem:[#allocation164_spill] sm:$0xff] }
 0x1de   : > { %1495 = vmatprep.subr.bf16.mxu1 %v2799_v36  ;;  %v3485_v18 = vld [vmem:[#allocation166_spill] sm:$0xff]  ;;  %v3487_v29 = vld [vmem:[#allocation159_spill] sm:$0xff]  ;;  %v3489_v28 = vld [vmem:[#allocation168_spill] sm:$0xff] }
 0x1df   : > { %v2869_v50 = vpack.c.bf16 %v3485_v18, %v3484_v20  ;;  %v2874_v51 = vpack.c.bf16 %v3487_v29, %v3486_v23  ;;  %v2879_v52 = vpack.c.bf16 %v3489_v28, %v3488_v25  ;;  %v3491_v32 = vld [vmem:[#allocation161_spill] sm:$0xff]  ;;  %v3494_v20 = vld [vmem:[#allocation170_spill] sm:$0xff]  ;;  %v3497_v23 = vld [vmem:[#allocation163_spill] sm:$0xff] }
 0x1e0   : > { %1433 = vmatpush1.bf16.msra.mxu0 %v2804_v37  ;;  %v3492_v33 = vld [vmem:[#allocation165_spill] sm:$0xff]  ;;  %v3495_v18 = vld [vmem:[#allocation174_spill] sm:$0xff]  ;;  %v3498_v29 = vld [vmem:[#allocation167_spill] sm:$0xff] }
 0x1e1   : > { %1435 = vmatprep.subr.bf16.mxu0 %v2809_v38  ;;  %1497 = vmatpush1.bf16.msra.mxu1 %v2814_v39  ;;  %3490 = vst [vmem:[#allocation213_spill] sm:$0xff] %v2879_v52  ;;  %v2884_v53 = vpack.c.bf16 %v3492_v33, %v3491_v32  ;;  %v2889_v54 = vpack.c.bf16 %v3495_v18, %v3494_v20  ;;  %v3500_v25 = vld [vmem:[#allocation172_spill] sm:$0xff]  ;;  %v3503_v32 = vld [vmem:[#allocation169_spill] sm:$0xff]  ;;  %v3506_v20 = vld [vmem:[#allocation178_spill] sm:$0xff] }
 0x1e2   : > { %1499 = vmatprep.subr.bf16.mxu1 %v2819_v40  ;;  %v2894_v55 = vpack.c.bf16 %v3498_v29, %v3497_v23  ;;  %v3501_v28 = vld [vmem:[#allocation176_spill] sm:$0xff]  ;;  %v3504_v33 = vld [vmem:[#allocation173_spill] sm:$0xff]  ;;  %v3507_v18 = vld [vmem:[#allocation182_spill] sm:$0xff] }
 0x1e3   : > { %3493 = vst [vmem:[#allocation214_spill] sm:$0xff] %v2884_v53  ;;  %3496 = vst [vmem:[#allocation215_spill] sm:$0xff] %v2889_v54  ;;  %v2899_v56 = vpack.c.bf16 %v3501_v28, %v3500_v25  ;;  %v2904_v57 = vpack.c.bf16 %v3504_v33, %v3503_v32  ;;  %v2909_v58 = vpack.c.bf16 %v3507_v18, %v3506_v20  ;;  %v3509_v23 = vld [vmem:[#allocation171_spill] sm:$0xff]  ;;  %v3512_v25 = vld [vmem:[#allocation180_spill] sm:$0xff] }
 0x1e4   : > { %1437 = vmatpush1.bf16.msra.mxu0 %v2824_v41  ;;  %3499 = vst [vmem:[#allocation216_spill] sm:$0xff] %v2894_v55  ;;  %v3510_v29 = vld [vmem:[#allocation175_spill] sm:$0xff]  ;;  %v3513_v28 = vld [vmem:[#allocation184_spill] sm:$0xff]  ;;  %v3515_v32 = vld [vmem:[#allocation177_spill] sm:$0xff] }
 0x1e5   : > { %1439 = vmatprep.subr.bf16.mxu0 %v2829_v42  ;;  %1501 = vmatpush1.bf16.msra.mxu1 %v2834_v43  ;;  %3502 = vst [vmem:[#allocation217_spill] sm:$0xff] %v2899_v56  ;;  %3505 = vst [vmem:[#allocation218_spill] sm:$0xff] %v2904_v57  ;;  %v2914_v59 = vpack.c.bf16 %v3510_v29, %v3509_v23  ;;  %v2919_v60 = vpack.c.bf16 %v3513_v28, %v3512_v25  ;;  %v3516_v33 = vld [vmem:[#allocation181_spill] sm:$0xff]  ;;  %v3518_v20 = vld [vmem:[#allocation186_spill] sm:$0xff] }
 0x1e6   : > { %1503 = vmatprep.subr.bf16.mxu1 %v2839_v44  ;;  %3508 = vst [vmem:[#allocation219_spill] sm:$0xff] %v2909_v58  ;;  %v2924_v61 = vpack.c.bf16 %v3516_v33, %v3515_v32  ;;  %v3519_v18 = vld [vmem:[#allocation190_spill] sm:$0xff]  ;;  %v3521_v23 = vld [vmem:[#allocation179_spill] sm:$0xff]  ;;  %v3524_v25 = vld [vmem:[#allocation188_spill] sm:$0xff] }
 0x1e7   : > { %3511 = vst [vmem:[#allocation220_spill] sm:$0xff] %v2914_v59  ;;  %3514 = vst [vmem:[#allocation221_spill] sm:$0xff] %v2919_v60  ;;  %v2929_v62 = vpack.c.bf16 %v3519_v18, %v3518_v20  ;;  %v3522_v29 = vld [vmem:[#allocation183_spill] sm:$0xff]  ;;  %v3525_v28 = vld [vmem:[#allocation192_spill] sm:$0xff] }
 0x1e8   : > { %1441 = vmatpush1.bf16.msra.mxu0 %v2844_v45  ;;  %3517 = vst [vmem:[#allocation222_spill] sm:$0xff] %v2924_v61  ;;  %v2934_v63 = vpack.c.bf16 %v3522_v29, %v3521_v23  ;;  %v3527_v32 = vld [vmem:[#allocation185_spill] sm:$0xff]  ;;  %v3530_v20 = vld [vmem:[#allocation194_spill] sm:$0xff]  ;;  %v3533_v23 = vld [vmem:[#allocation187_spill] sm:$0xff] }
 0x1e9   : > { %1443 = vmatprep.subr.bf16.mxu0 %v2849_v46  ;;  %1505 = vmatpush1.bf16.msra.mxu1 %v2854_v47  ;;  %3520 = vst [vmem:[#allocation223_spill] sm:$0xff] %v2929_v62  ;;  %v3528_v33 = vld [vmem:[#allocation189_spill] sm:$0xff]  ;;  %v3531_v18 = vld [vmem:[#allocation198_spill] sm:$0xff]  ;;  %v3534_v29 = vld [vmem:[#allocation191_spill] sm:$0xff] }
 0x1ea   : > { %1507 = vmatprep.subr.bf16.mxu1 %v2859_v48  ;;  %3523 = vst [vmem:[#allocation224_spill] sm:$0xff] %v2934_v63 }
 0x1ec   : > { %1445 = vmatpush1.bf16.msra.mxu0 %v2864_v49 }
 0x1ed   : > { %1447 = vmatprep.subr.bf16.mxu0 %v2869_v50  ;;  %1509 = vmatpush1.bf16.msra.mxu1 %v2874_v51 }
 0x1ee   : > { %1511 = vmatprep.subr.bf16.mxu1 %v2879_v52  ;;  %v3583_v52 = vld [vmem:[#allocation44_spill] sm:$0xff] }
 0x1f0   : > { %1449 = vmatpush1.bf16.msra.mxu0 %v2884_v53 }
 0x1f1   : > { %1451 = vmatprep.subr.bf16.mxu0 %v2889_v54  ;;  %1513 = vmatpush1.bf16.msra.mxu1 %v2894_v55  ;;  %v3564_v54 = vld [vmem:[#allocation30_spill] sm:$0xff] }
 0x1f2   : > { %1515 = vmatprep.subr.bf16.mxu1 %v2899_v56 }
 0x1f4   : > { %1453 = vmatpush1.bf16.msra.mxu0 %v2904_v57  ;;  %v2939_v57 = vpack.c.bf16 %v3525_v28, %v3524_v25  ;;  %v3536_v25 = vld [vmem:[#allocation196_spill] sm:$0xff] }
 0x1f5   : > { %1455 = vmatprep.subr.bf16.mxu0 %v2909_v58  ;;  %1517 = vmatpush1.bf16.msra.mxu1 %v2914_v59  ;;  %v2944_v58 = vpack.c.bf16 %v3528_v33, %v3527_v32  ;;  %v2949_v59 = vpack.c.bf16 %v3531_v18, %v3530_v20  ;;  %v3537_v28 = vld [vmem:[#allocation200_spill] sm:$0xff]  ;;  %v3539_v32 = vld [vmem:[#allocation193_spill] sm:$0xff]  ;;  %v3542_v20 = vld [vmem:[#allocation202_spill] sm:$0xff] }
 0x1f6   : > { %1519 = vmatprep.subr.bf16.mxu1 %v2919_v60  ;;  %3526 = vst [vmem:[#allocation225_spill] sm:$0xff] %v2939_v57  ;;  %v2954_v60 = vpack.c.bf16 %v3534_v29, %v3533_v23  ;;  %v3540_v33 = vld [vmem:[#allocation197_spill] sm:$0xff]  ;;  %v3543_v18 = vld [vmem:[#allocation206_spill] sm:$0xff]  ;;  %v3545_v23 = vld [vmem:[#allocation195_spill] sm:$0xff] }
 0x1f7   : > { %3529 = vst [vmem:[#allocation226_spill] sm:$0xff] %v2944_v58  ;;  %3532 = vst [vmem:[#allocation227_spill] sm:$0xff] %v2949_v59  ;;  %v3546_v29 = vld [vmem:[#allocation199_spill] sm:$0xff] }
 0x1f8   : > { %1457 = vmatpush1.bf16.msra.mxu0 %v2924_v61  ;;  %3535 = vst [vmem:[#allocation228_spill] sm:$0xff] %v2954_v60  ;;  %v2959_v61 = vpack.c.bf16 %v3537_v28, %v3536_v25  ;;  %v3548_v25 = vld [vmem:[#allocation204_spill] sm:$0xff] }
 0x1f9   : > { %1459 = vmatprep.subr.bf16.mxu0 %v2929_v62  ;;  %1521 = vmatpush1.bf16.msra.mxu1 %v2934_v63  ;;  %v2964_v62 = vpack.c.bf16 %v3540_v33, %v3539_v32  ;;  %v2969_v63 = vpack.c.bf16 %v3543_v18, %v3542_v20  ;;  %v3549_v28 = vld [vmem:[#allocation208_spill] sm:$0xff]  ;;  %v3551_v32 = vld [vmem:[#allocation201_spill] sm:$0xff]  ;;  %v3554_v20 = vld [vmem:[#allocation18_spill] sm:$0xff] }
 0x1fa   : > { %1523 = vmatprep.subr.bf16.mxu1 %v2939_v57  ;;  %3538 = vst [vmem:[#allocation229_spill] sm:$0xff] %v2959_v61  ;;  %v2974_v57 = vpack.c.bf16 %v3546_v29, %v3545_v23  ;;  %v3552_v33 = vld [vmem:[#allocation205_spill] sm:$0xff]  ;;  %v3555_v18 = vld [vmem:[#allocation22_spill] sm:$0xff]  ;;  %v3556_v23 = vld [vmem:[#allocation203_spill] sm:$0xff] }
 0x1fb   : > { %3541 = vst [vmem:[#allocation230_spill] sm:$0xff] %v2964_v62  ;;  %3544 = vst [vmem:[#allocation231_spill] sm:$0xff] %v2969_v63  ;;  %v3557_v29 = vld [vmem:[#allocation207_spill] sm:$0xff] }
 0x1fc   : > { %1461 = vmatpush1.bf16.msra.mxu0 %v2944_v58  ;;  %3547 = vst [vmem:[#allocation232_spill] sm:$0xff] %v2974_v57  ;;  %v2979_v58 = vpack.c.bf16 %v3549_v28, %v3548_v25  ;;  %v3559_v25 = vld [vmem:[#allocation20_spill] sm:$0xff] }
 0x1fd   : > { %1463 = vmatprep.subr.bf16.mxu0 %v2949_v59  ;;  %1525 = vmatpush1.bf16.msra.mxu1 %v2954_v60  ;;  %v2984_v59 = vpack.c.bf16 %v3552_v33, %v3551_v32  ;;  %v1534_v60 = vpack.c.bf16 %v3555_v18, %v3554_v20  ;;  %v3560_v28 = vld [vmem:[#allocation24_spill] sm:$0xff]  ;;  %v3561_v32 = vld [vmem:[#allocation17_spill] sm:$0xff]  ;;  %v3565_v18 = vld [vmem:[#allocation19_spill] sm:$0xff] }
 0x1fe   : > { %1527 = vmatprep.subr.bf16.mxu1 %v2959_v61  ;;  %3550 = vst [vmem:[#allocation233_spill] sm:$0xff] %v2979_v58  ;;  %v2992_v61 = vpack.c.bf16 %v3557_v29, %v3556_v23  ;;  %v3562_v33 = vld [vmem:[#allocation21_spill] sm:$0xff]  ;;  %v3567_v29 = vld [vmem:[#allocation28_spill] sm:$0xff] }
 0x1ff   : > { %3553 = vst [vmem:[#allocation234_spill] sm:$0xff] %v2984_v59  ;;  %v1536_v56 = vpack.c.bf16 %v3562_v33, %v3561_v32  ;;  %v2058_v32 = vmov 0.0   ;;  %v3574_v33 = vld [vmem:[#allocation31_spill] sm:$0xff] }
 0x200   : > { %1465 = vmatpush1.bf16.msra.mxu0 %v2964_v62  ;;  %3558 = vst [vmem:[#allocation235_spill] sm:$0xff] %v2992_v61  ;;  %v1566_v62 = vpack.c.bf16 %v3560_v28, %v3559_v25  ;;  %v3569_v28 = vld [vmem:[#allocation25_spill] sm:$0xff] }
 0x201   : > { %1467 = vmatprep.subr.bf16.mxu0 %v2969_v63  ;;  %1529 = vmatpush1.bf16.msra.mxu1 %v2974_v57  ;;  %v3563_v63 = vld [vmem:[#allocation26_spill] sm:$0xff]  ;;  %v3566_v57 = vld [vmem:[#allocation23_spill] sm:$0xff] }
 0x202   : > { %1531 = vmatprep.subr.bf16.mxu1 %v2979_v58  ;;  %v1538_v20 = vpack.c.bf16 %v3564_v54, %v3563_v63  ;;  %v1568_v23 = vpack.c.bf16 %v3566_v57, %v3565_v18  ;;  %v3568_v58 = vld [vmem:[#allocation32_spill] sm:$0xff]  ;;  %v3572_v54 = vld [vmem:[#allocation38_spill] sm:$0xff]  ;;  %v3573_v57 = vld [vmem:[#allocation27_spill] sm:$0xff] }
 0x203   : > { %v1570_v25 = vpack.c.bf16 %v3568_v58, %v3567_v29  ;;  %v1572_v18 = vpack.c.bf16 %v3574_v33, %v3573_v57  ;;  %v3576_v58 = vld [vmem:[#allocation40_spill] sm:$0xff]  ;;  %v3577_v29 = vld [vmem:[#allocation33_spill] sm:$0xff] }
 0x204   : > { %1469 = vmatpush1.bf16.msra.mxu0 %v2984_v59  ;;  %v3570_v59 = vld [vmem:[#allocation29_spill] sm:$0xff]  ;;  %v3584_v57 = vld [vmem:[#allocation48_spill] sm:$0xff] }
 0x205   : > { %1535 = vmatprep.subr.bf16.mxu0 %v1534_v60  ;;  %1533 = vmatpush1.bf16.msra.mxu1 %v2992_v61  ;;  %v1540_v55 = vpack.c.bf16 %v3570_v59, %v3569_v28  ;;  %v3571_v60 = vld [vmem:[#allocation34_spill] sm:$0xff]  ;;  %v3578_v59 = vld [vmem:[#allocation37_spill] sm:$0xff] }
 0x206   : > { %1567 = vmatprep.subr.bf16.mxu1 %v1566_v62  ;;  %v1542_v63 = vpack.c.bf16 %v3572_v54, %v3571_v60  ;;  %v3575_v62 = vld [vmem:[#allocation36_spill] sm:$0xff]  ;;  %v1544_v28 = vpack.c.bf16 %v3578_v59, %v3577_v29  ;;  %v3580_v61 = vld [vmem:[#allocation46_spill] sm:$0xff]  ;;  %v3581_v60 = vld [vmem:[#allocation35_spill] sm:$0xff] }
 0x207   : > { %736 = vmatmul.mubr.f32.vlgmr.msra.gmra.mrb[0].mxu0 %v2042_v30  ;;  %v3582_v54 = vld [vmem:[#allocation39_spill] sm:$0xff]  ;;  %v3586_v33 = vld [vmem:[#allocation45_spill] sm:$0xff] }
 0x208   : > { %1537 = vmatpush1.bf16.msra.mxu0 %v1536_v56  ;;  %911 = vmatprep.mubr.f32.mxu0 %v2058_v32  ;;  %v1574_v56 = vpack.c.bf16 %v3576_v58, %v3575_v62  ;;  %v3588_v58 = vld [vmem:[#allocation54_spill] sm:$0xff]  ;;  %v3590_v59 = vld [vmem:[#allocation47_spill] sm:$0xff] }
 0x209   : > { %1539 = vmatprep.subr.bf16.mxu0 %v1538_v20  ;;  %807 = vmatmul.mubr.f32.vlgmr.msra.gmra.mrb[0].mxu1 %v2042_v30  ;;  %v3579_v20 = vld [vmem:[#allocation42_spill] sm:$0xff] }
 0x20a   : > { %1569 = vmatpush1.bf16.msra.mxu1 %v1568_v23  ;;  %982 = vmatprep.mubr.f32.mxu1 %v2058_v32  ;;  %v1546_v53 = vpack.c.bf16 %v3580_v61, %v3579_v20  ;;  %v1576_v23 = vpack.c.bf16 %v3582_v54, %v3581_v60  ;;  %v1578_v32 = vpack.c.bf16 %v3584_v57, %v3583_v52  ;;  %v3592_v20 = vld [vmem:[#allocation56_spill] sm:$0xff]  ;;  %v3594_v54 = vld [vmem:[#allocation53_spill] sm:$0xff]  ;;  %v3596_v57 = vld [vmem:[#allocation62_spill] sm:$0xff] }
 0x20b   : > { %1571 = vmatprep.subr.bf16.mxu1 %v1570_v25  ;;  %v3585_v25 = vld [vmem:[#allocation41_spill] sm:$0xff] }
 0x20c   : > { %1541 = vmatpush1.bf16.msra.mxu0 %v1540_v55  ;;  %v1548_v62 = vpack.c.bf16 %v3586_v33, %v3585_v25  ;;  %v3587_v55 = vld [vmem:[#allocation50_spill] sm:$0xff]  ;;  %v3598_v33 = vld [vmem:[#allocation55_spill] sm:$0xff] }
 0x20d   : > { %1543 = vmatprep.subr.bf16.mxu0 %v1542_v63  ;;  %v1550_v29 = vpack.c.bf16 %v3588_v58, %v3587_v55  ;;  %v3589_v63 = vld [vmem:[#allocation43_spill] sm:$0xff]  ;;  %v3600_v58 = vld [vmem:[#allocation64_spill] sm:$0xff] }
 0x20e   : > { %1573 = vmatpush1.bf16.msra.mxu1 %v1572_v18  ;;  %v1580_v61 = vpack.c.bf16 %v3590_v59, %v3589_v63  ;;  %v3591_v18 = vld [vmem:[#allocation52_spill] sm:$0xff]  ;;  %v3602_v59 = vld [vmem:[#allocation61_spill] sm:$0xff] }
 0x20f   : > { %1575 = vmatprep.subr.bf16.mxu1 %v1574_v56  ;;  %v1582_v60 = vpack.c.bf16 %v3592_v20, %v3591_v18  ;;  %v3593_v56 = vld [vmem:[#allocation49_spill] sm:$0xff]  ;;  %v3604_v20 = vld [vmem:[#allocation70_spill] sm:$0xff] }
 0x210   : > { %1545 = vmatpush1.bf16.msra.mxu0 %v1544_v28  ;;  %v1552_v52 = vpack.c.bf16 %v3594_v54, %v3593_v56  ;;  %v3595_v28 = vld [vmem:[#allocation58_spill] sm:$0xff]  ;;  %v3606_v54 = vld [vmem:[#allocation63_spill] sm:$0xff] }
 0x211   : > { %1547 = vmatprep.subr.bf16.mxu0 %v1546_v53  ;;  %v1554_v25 = vpack.c.bf16 %v3596_v57, %v3595_v28  ;;  %v3597_v53 = vld [vmem:[#allocation51_spill] sm:$0xff]  ;;  %v3608_v57 = vld [vmem:[#allocation72_spill] sm:$0xff] }
 0x212   : > { %1577 = vmatpush1.bf16.msra.mxu1 %v1576_v23  ;;  %v1584_v55 = vpack.c.bf16 %v3598_v33, %v3597_v53  ;;  %v3599_v23 = vld [vmem:[#allocation60_spill] sm:$0xff]  ;;  %v3610_v33 = vld [vmem:[#allocation69_spill] sm:$0xff] }
 0x213   : > { %1579 = vmatprep.subr.bf16.mxu1 %v1578_v32  ;;  %v1586_v63 = vpack.c.bf16 %v3600_v58, %v3599_v23  ;;  %v3601_v32 = vld [vmem:[#allocation57_spill] sm:$0xff]  ;;  %v3612_v58 = vld [vmem:[#allocation78_spill] sm:$0xff] }
 0x214   : > { %1549 = vmatpush1.bf16.msra.mxu0 %v1548_v62  ;;  %v1556_v18 = vpack.c.bf16 %v3602_v59, %v3601_v32  ;;  %v3603_v62 = vld [vmem:[#allocation66_spill] sm:$0xff]  ;;  %v3614_v59 = vld [vmem:[#allocation71_spill] sm:$0xff] }
 0x215   : > { %1551 = vmatprep.subr.bf16.mxu0 %v1550_v29  ;;  %v1558_v56 = vpack.c.bf16 %v3604_v20, %v3603_v62  ;;  %v3605_v29 = vld [vmem:[#allocation59_spill] sm:$0xff]  ;;  %v3616_v20 = vld [vmem:[#allocation80_spill] sm:$0xff] }
 0x216   : > { %1581 = vmatpush1.bf16.msra.mxu1 %v1580_v61  ;;  %v1588_v28 = vpack.c.bf16 %v3606_v54, %v3605_v29  ;;  %v3607_v61 = vld [vmem:[#allocation68_spill] sm:$0xff]  ;;  %v3618_v54 = vld [vmem:[#allocation77_spill] sm:$0xff] }
 0x217   : > { %1583 = vmatprep.subr.bf16.mxu1 %v1582_v60  ;;  %v1590_v53 = vpack.c.bf16 %v3608_v57, %v3607_v61  ;;  %v3609_v60 = vld [vmem:[#allocation65_spill] sm:$0xff]  ;;  %v3620_v57 = vld [vmem:[#allocation79_spill] sm:$0xff] }
 0x218   : > { %1553 = vmatpush1.bf16.msra.mxu0 %v1552_v52  ;;  %v1560_v23 = vpack.c.bf16 %v3610_v33, %v3609_v60  ;;  %v3611_v52 = vld [vmem:[#allocation74_spill] sm:$0xff] }
 0x219   : > { %1555 = vmatprep.subr.bf16.mxu0 %v1554_v25  ;;  %v1562_v32 = vpack.c.bf16 %v3612_v58, %v3611_v52  ;;  %v3613_v25 = vld [vmem:[#allocation67_spill] sm:$0xff] }
 0x21a   : > { %1585 = vmatpush1.bf16.msra.mxu1 %v1584_v55  ;;  %v1592_v62 = vpack.c.bf16 %v3614_v59, %v3613_v25  ;;  %v3615_v55 = vld [vmem:[#allocation76_spill] sm:$0xff] }
 0x21b   : > { %1587 = vmatprep.subr.bf16.mxu1 %v1586_v63  ;;  %v1594_v29 = vpack.c.bf16 %v3616_v20, %v3615_v55  ;;  %v3617_v63 = vld [vmem:[#allocation73_spill] sm:$0xff] }
 0x21c   : > { %1557 = vmatpush1.bf16.msra.mxu0 %v1556_v18  ;;  %v1564_v61 = vpack.c.bf16 %v3618_v54, %v3617_v63  ;;  %v3619_v18 = vld [vmem:[#allocation75_spill] sm:$0xff] }
 0x21d   : > { %1559 = vmatprep.subr.bf16.mxu0 %v1558_v56  ;;  %v1596_v56 = vpack.c.bf16 %v3620_v57, %v3619_v18 }
 0x21e   : > { %1589 = vmatpush1.bf16.msra.mxu1 %v1588_v28 }
 0x21f   : > { %1591 = vmatprep.subr.bf16.mxu1 %v1590_v53  ;;  %v3621_v53 = vld [vmem:[#allocation209_spill] sm:$0xff] }
 0x220   : > { %1561 = vmatpush1.bf16.msra.mxu0 %v1560_v23  ;;  %v3622_v23 = vld [vmem:[#allocation210_spill] sm:$0xff] }
 0x221   : > { %1563 = vmatprep.subr.bf16.mxu0 %v1562_v32 }
 0x222   : > { %1593 = vmatpush1.bf16.msra.mxu1 %v1592_v62  ;;  %v3623_v62 = vld [vmem:[#allocation212_spill] sm:$0xff] }
 0x223   : > { %1595 = vmatprep.subr.bf16.mxu1 %v1594_v29  ;;  %v3624_v29 = vld [vmem:[#allocation211_spill] sm:$0xff] }
 0x224   : > { %1565 = vmatpush1.bf16.msra.mxu0 %v1564_v61 }
 0x225   :  { %1599 = vmatprep.subr.bf16.mxu0 (%p663_p12), %v2677_v17  ;;  %v1184_v17 = vld [vmem:[#allocation11 + $0x8] sm:$0xff] (%p663_p12) }
 0x226   : > { %1597 = vmatpush1.bf16.msra.mxu1 %v1596_v56 }
 0x227   : > { %912 = vmatmul.mubr.f32.vlgmr.msra.gmra.mrb[2].mxu0 %v2042_v30  ;;  %1663 = vmatprep.subr.bf16.mxu1 (%p663_p12), %v2690_v7  ;;  %v1185_v7 = vld [vmem:[#allocation11 + $0x10] sm:$0xff] (%p663_p12) }
 0x228   :  { %1601 = vmatpush1.bf16.msra.mxu0 (%p663_p12), %v2681_v15 }
 0x229   : > { %983 = vmatmul.mubr.f32.vlgmr.msra.gmra.mrb[2].mxu1 %v2042_v30  ;;  %1603 = vmatprep.subr.bf16.mxu0 (%p663_p12), %v2685_v6  ;;  %v2059_v6 = vmov (%p663_p12), 0.0|0.0  }
 0x22a   :  { %1665 = vmatpush1.bf16.msra.mxu1 (%p663_p12), %v2694_v3  ;;  %v1186_v3 = vld [vmem:[#allocation11 + $0x18] sm:$0xff] (%p663_p12) }
 0x22b   :  { %1667 = vmatprep.subr.bf16.mxu1 (%p663_p12), %v2703_v12  ;;  %v1187_v12 = vld [vmem:[#allocation11 + $0x20] sm:$0xff] (%p663_p12) }
 0x22c   :  { %1605 = vmatpush1.bf16.msra.mxu0 (%p663_p12), %v2699_v10  ;;  %v1730_v10 = vpack.c.bf16 (%p663_p12), %v1186_v3, %v1185_v7 }
 0x22d   :  { %1607 = vmatprep.subr.bf16.mxu0 (%p663_p12), %v2708_v11  ;;  %v1188_v11 = vld [vmem:[#allocation11 + $0x28] sm:$0xff] (%p663_p12) }
 0x22e   :  { %1669 = vmatpush1.bf16.msra.mxu1 (%p663_p12), %v2714_v2  ;;  %v1733_v2 = vpack.c.bf16 (%p663_p12), %v1188_v11, %v1187_v12 }
 0x22f   :  { %1671 = vmatprep.subr.bf16.mxu1 (%p663_p12), %v2719_v22  ;;  %v1189_v22 = vld [vmem:[#allocation11 + $0x30] sm:$0xff] (%p663_p12) }
 0x230   :  { %1609 = vmatpush1.bf16.msra.mxu0 (%p663_p12), %v2724_v16  ;;  %v1190_v16 = vld [vmem:[#allocation11 + $0x38] sm:$0xff] (%p663_p12) }
 0x231   :  { %1611 = vmatprep.subr.bf16.mxu0 (%p663_p12), %v2729_v13  ;;  %v1736_v13 = vpack.c.bf16 (%p663_p12), %v1190_v16, %v1189_v22 }
 0x232   :  { %1673 = vmatpush1.bf16.msra.mxu1 (%p663_p12), %v2734_v5  ;;  %v1191_v5 = vld [vmem:[#allocation11 + $0x40] sm:$0xff] (%p663_p12) }
 0x233   :  { %1675 = vmatprep.subr.bf16.mxu1 (%p663_p12), %v2739_v24  ;;  %v1192_v24 = vld [vmem:[#allocation11 + $0x48] sm:$0xff] (%p663_p12) }
 0x234   :  { %1613 = vmatpush1.bf16.msra.mxu0 (%p663_p12), %v2744_v1  ;;  %v1739_v1 = vpack.c.bf16 (%p663_p12), %v1192_v24, %v1191_v5 }
 0x235   :  { %1615 = vmatprep.subr.bf16.mxu0 (%p663_p12), %v2749_v21  ;;  %v1193_v21 = vld [vmem:[#allocation11 + $0x50] sm:$0xff] (%p663_p12) }
 0x236   :  { %1677 = vmatpush1.bf16.msra.mxu1 (%p663_p12), %v2754_v9  ;;  %v1194_v9 = vld [vmem:[#allocation11 + $0x58] sm:$0xff] (%p663_p12) }
 0x237   :  { %1679 = vmatprep.subr.bf16.mxu1 (%p663_p12), %v2759_v4  ;;  %v1742_v4 = vpack.c.bf16 (%p663_p12), %v1194_v9, %v1193_v21 }
 0x238   :  { %1617 = vmatpush1.bf16.msra.mxu0 (%p663_p12), %v2764_v0  ;;  %v3630_v0 = vld [vmem:[#allocation213_spill] sm:$0xff] (%p663_p12) }
 0x239   :  { %1619 = vmatprep.subr.bf16.mxu0 (%p663_p12), %v2769_v27  ;;  %v3633_v27 = vld [vmem:[#allocation215_spill] sm:$0xff] (%p663_p12) }
 0x23a   :  { %1681 = vmatpush1.bf16.msra.mxu1 (%p663_p12), %v2774_v19  ;;  %v3631_v19 = vld [vmem:[#allocation214_spill] sm:$0xff] (%p663_p12) }
 0x23b   :  { %1683 = vmatprep.subr.bf16.mxu1 (%p663_p12), %v2779_v31  ;;  %v3634_v31 = vld [vmem:[#allocation217_spill] sm:$0xff] (%p663_p12) }
 0x23c   :  { %1621 = vmatpush1.bf16.msra.mxu0 (%p663_p12), %v2784_v34  ;;  %v3635_v34 = vld [vmem:[#allocation218_spill] sm:$0xff] (%p663_p12) }
 0x23d   :  { %1623 = vmatprep.subr.bf16.mxu0 (%p663_p12), %v2789_v26  ;;  %v3632_v26 = vld [vmem:[#allocation216_spill] sm:$0xff] (%p663_p12) }
 0x23e   :  { %1685 = vmatpush1.bf16.msra.mxu1 (%p663_p12), %v2794_v35  ;;  %v3636_v35 = vld [vmem:[#allocation220_spill] sm:$0xff] (%p663_p12) }
 0x23f   :  { %1687 = vmatprep.subr.bf16.mxu1 (%p663_p12), %v2799_v36  ;;  %v3637_v36 = vld [vmem:[#allocation219_spill] sm:$0xff] (%p663_p12) }
 0x240   :  { %1625 = vmatpush1.bf16.msra.mxu0 (%p663_p12), %v2804_v37  ;;  %v3638_v37 = vld [vmem:[#allocation221_spill] sm:$0xff] (%p663_p12) }
 0x241   :  { %1627 = vmatprep.subr.bf16.mxu0 (%p663_p12), %v2809_v38  ;;  %v3639_v38 = vld [vmem:[#allocation222_spill] sm:$0xff] (%p663_p12) }
 0x242   :  { %1689 = vmatpush1.bf16.msra.mxu1 (%p663_p12), %v2814_v39  ;;  %v3640_v39 = vld [vmem:[#allocation224_spill] sm:$0xff] (%p663_p12) }
 0x243   :  { %1691 = vmatprep.subr.bf16.mxu1 (%p663_p12), %v2819_v40  ;;  %v3641_v40 = vld [vmem:[#allocation223_spill] sm:$0xff] (%p663_p12) }
 0x244   :  { %1629 = vmatpush1.bf16.msra.mxu0 (%p663_p12), %v2824_v41  ;;  %v3642_v41 = vld [vmem:[#allocation225_spill] sm:$0xff] (%p663_p12) }
 0x245   :  { %1631 = vmatprep.subr.bf16.mxu0 (%p663_p12), %v2829_v42  ;;  %v3643_v42 = vld [vmem:[#allocation226_spill] sm:$0xff] (%p663_p12) }
 0x246   :  { %1693 = vmatpush1.bf16.msra.mxu1 (%p663_p12), %v2834_v43  ;;  %v3644_v43 = vld [vmem:[#allocation228_spill] sm:$0xff] (%p663_p12) }
 0x247   :  { %1695 = vmatprep.subr.bf16.mxu1 (%p663_p12), %v2839_v44  ;;  %v3645_v44 = vld [vmem:[#allocation227_spill] sm:$0xff] (%p663_p12) }
 0x248   :  { %1633 = vmatpush1.bf16.msra.mxu0 (%p663_p12), %v2844_v45  ;;  %v3646_v45 = vld [vmem:[#allocation229_spill] sm:$0xff] (%p663_p12) }
 0x249   :  { %1635 = vmatprep.subr.bf16.mxu0 (%p663_p12), %v2849_v46  ;;  %v3647_v46 = vld [vmem:[#allocation230_spill] sm:$0xff] (%p663_p12) }
 0x24a   :  { %1697 = vmatpush1.bf16.msra.mxu1 (%p663_p12), %v2854_v47  ;;  %v3648_v47 = vld [vmem:[#allocation232_spill] sm:$0xff] (%p663_p12) }
 0x24b   :  { %1699 = vmatprep.subr.bf16.mxu1 (%p663_p12), %v2859_v48  ;;  %v3649_v48 = vld [vmem:[#allocation231_spill] sm:$0xff] (%p663_p12) }
 0x24c   :  { %1637 = vmatpush1.bf16.msra.mxu0 (%p663_p12), %v2864_v49  ;;  %v3650_v49 = vld [vmem:[#allocation233_spill] sm:$0xff] (%p663_p12) }
 0x24d   :  { %1639 = vmatprep.subr.bf16.mxu0 (%p663_p12), %v2869_v50  ;;  %v3651_v50 = vld [vmem:[#allocation234_spill] sm:$0xff] (%p663_p12) }
 0x24e   :  { %1701 = vmatpush1.bf16.msra.mxu1 (%p663_p12), %v2874_v51  ;;  %v3652_v51 = vld [vmem:[#allocation235_spill] sm:$0xff] (%p663_p12) }
 0x24f   :  { %1703 = vmatprep.subr.bf16.mxu1 (%p663_p12), %v3630_v0 }
 0x250   :  { %1641 = vmatpush1.bf16.msra.mxu0 (%p663_p12), %v3631_v19 }
 0x251   :  { %1643 = vmatprep.subr.bf16.mxu0 (%p663_p12), %v3633_v27 }
 0x252   :  { %1705 = vmatpush1.bf16.msra.mxu1 (%p663_p12), %v3632_v26 }
 0x253   :  { %1707 = vmatprep.subr.bf16.mxu1 (%p663_p12), %v3634_v31 }
 0x254   :  { %1645 = vmatpush1.bf16.msra.mxu0 (%p663_p12), %v3635_v34 }
 0x255   :  { %1647 = vmatprep.subr.bf16.mxu0 (%p663_p12), %v3637_v36 }
 0x256   :  { %1709 = vmatpush1.bf16.msra.mxu1 (%p663_p12), %v3636_v35 }
 0x257   :  { %1711 = vmatprep.subr.bf16.mxu1 (%p663_p12), %v3638_v37 }
 0x258   :  { %1649 = vmatpush1.bf16.msra.mxu0 (%p663_p12), %v3639_v38 }
 0x259   :  { %1651 = vmatprep.subr.bf16.mxu0 (%p663_p12), %v3641_v40 }
 0x25a   :  { %1713 = vmatpush1.bf16.msra.mxu1 (%p663_p12), %v3640_v39 }
 0x25b   :  { %1715 = vmatprep.subr.bf16.mxu1 (%p663_p12), %v3642_v41 }
 0x25c   :  { %1653 = vmatpush1.bf16.msra.mxu0 (%p663_p12), %v3643_v42 }
 0x25d   :  { %1655 = vmatprep.subr.bf16.mxu0 (%p663_p12), %v3645_v44 }
 0x25e   :  { %1717 = vmatpush1.bf16.msra.mxu1 (%p663_p12), %v3644_v43 }
 0x25f   :  { %1719 = vmatprep.subr.bf16.mxu1 (%p663_p12), %v3646_v45  ;;  %v1344_v45 = vld [vmem:[%s3182_s7] ss:$0 sm:$0xff] (%p663_p12) }
 0x260   :  { %1657 = vmatpush1.bf16.msra.mxu0 (%p663_p12), %v3647_v46 }
 0x261   :  { %1659 = vmatprep.subr.bf16.mxu0 (%p663_p12), %v3649_v48 }
 0x262   :  { %1721 = vmatpush1.bf16.msra.mxu1 (%p663_p12), %v3648_v47 }
 0x263   :  { %1723 = vmatprep.subr.bf16.mxu1 (%p663_p12), %v3650_v49 }
 0x264   :  { %1661 = vmatpush1.bf16.msra.mxu0 (%p663_p12), %v3651_v50 }
 0x265   :  { %1726 = vmatprep.subr.bf16.mxu0 (%p663_p12), %v2059_v6 }
 0x266   :  { %1725 = vmatpush1.bf16.msra.mxu1 (%p663_p12), %v3652_v51 }
 0x2da   : > { %v737_v28 = vpop.f32.mrb[0].mxu0 }
 0x2db   : > { %v738_v60 = vadd.f32 %v737_v28, %v3621_v53  ;;  %v739_v33 = vpop.f32.mrb[1].mxu0 }
 0x2dc   : > { %v740_v52 = vadd.f32 %v739_v33, %v3622_v23  ;;  %v808_v58 = vpop.f32.mrb[0].mxu1 }
 0x2dd   : > { %v1332_v32 = vmul.f32 -1.442695, %v738_v60  ;;  %v810_v25 = vpop.f32.mrb[1].mxu1  ;;  %v809_v63 = vadd.f32 %v808_v58, %v3624_v29  ;;  %v844_v58 = vld [vmem:[%s842_s27 + $0x8] sm:$0xff] }
 0x2de   : > { %v1333_v59 = vmul.f32 -1.442695, %v740_v52  ;;  %v811_v55 = vadd.f32 %v810_v25, %v3623_v62  ;;  %v843_v52 = vld [vmem:[%s842_s27] sm:$0xff] }
 0x2df   : > { %1820 = vpow2.f32 %v1332_v32 }
 0x2e0   : > { %1822 = vpow2.f32 %v1333_v59  ;;  %v1334_v20 = vmul.f32 -1.442695, %v811_v55 }
 0x2e2   : > { %1824 = vpow2.f32 %v1334_v20 }
 0x2e3   : > { %1826 = vtanh.f32 %v809_v63 }
 0x2e9   : > { %v1821_v54 = vpop.eup %1820 }
 0x2ea   : > { %v1823_v30 = vpop.eup %1822  ;;  %v816_v61 = vadd.f32 1.0, %v1821_v54 }
 0x2eb   : > { %v822_v18 = vadd.f32 1.0, %v1823_v30  ;;  %v846_v30 = vld [vmem:[%s842_s27 + $0x18] sm:$0xff] }
 0x2ec   : > { %1828 = vrcp.f32 %v816_v61  ;;  %v1825_v57 = vpop.eup %1824 }
 0x2ed   : > { %1830 = vrcp.f32 %v822_v18  ;;  %v1827_v56 = vpop.eup %1826  ;;  %v829_v53 = vadd.f32 1.0, %v1825_v57  ;;  %v845_v18 = vld [vmem:[%s842_s27 + $0x10] sm:$0xff] }
 0x2ef   : > { %1832 = vrcp.f32 %v829_v53 }
 0x2f6   : > { %v1829_v28 = vpop.eup %1828 }
 0x2f7   : > { %v1831_v60 = vpop.eup %1830  ;;  %v833_v33 = vmul.f32 %v1829_v28, %v1827_v56 }
 0x2f8   : > { %v832_v23 = vmul.f32 %v2030_v8, %v1831_v60 }
 0x2f9   : > { %v1833_v57 = vpop.eup %1832 }
 0x2fa   : > { %v3069_v8 = vadd.f32 %v833_v33, %v832_v23   ;;  %v913_v25 = vpop.f32.mrb[2].mxu0 }
 0x2fb   : > { %v989_v59 = vadd.f32 %v913_v25, %v843_v52  ;;  %v915_v62 = vpop.f32.mrb[3].mxu0 }
 0x2fc   : > { %v3625_v32 = vmov %v3069_v8  ;;  %v990_v55 = vadd.f32 %v915_v62, %v844_v58  ;;  %v984_v20 = vpop.f32.mrb[2].mxu1 }
 0x2fd   : > { %1834 = vtanh.f32 %v3625_v32  ;;  %v1338_v29 = vmul.f32 -1.442695, %v989_v59  ;;  %v986_v63 = vpop.f32.mrb[3].mxu1  ;;  %v991_v8 = vadd.f32 %v984_v20, %v845_v18 }
 0x2fe   : > { %v1339_v54 = vmul.f32 -1.442695, %v990_v55  ;;  %v992_v61 = vadd.f32 %v986_v63, %v846_v30 }
 0x2ff   : > { %1836 = vpow2.f32 %v1338_v29 }
 0x300   : > { %1838 = vpow2.f32 %v1339_v54  ;;  %v1340_v56 = vmul.f32 -1.442695, %v992_v61 }
 0x302   : > { %1840 = vpow2.f32 %v1340_v56 }
 0x303   : > { %1842 = vtanh.f32 %v991_v8  ;;  %v3627_v8 = vmov %v3625_v32 }
 0x304   :  { %v1198_v8 = vld [vmem:[#allocation11 + $0x78] sm:$0xff] (%p663_p12) }
 0x307   : > { %v1835_v28 = vpop.eup %1834 }
 0x308   : > { %v836_v53 = vmul.f32 %v1835_v28, %v1833_v57   ;;  %v3653_v57 = vmov (%p663_p12), 0.0   ;;  %v1197_v28 = vld [vmem:[#allocation11 + $0x70] sm:$0xff] (%p663_p12) }
 0x309   : > { %v1837_v60 = vpop.eup %1836 }
 0x30a   : > { %v1839_v33 = vpop.eup %1838  ;;  %v996_v23 = vadd.f32 1.0, %v1837_v60  ;;  %v3628_v18 = vmov %v836_v53  ;;  %1081 = vmatprep.mubr.f32.mxu0 (%p663_p12), %v836_v53  ;;  %1152 = vmatprep.mubr.f32.mxu1 (%p663_p12), %v836_v53  ;;  %v1748_v53 = vpack.c.bf16 (%p663_p12), %v1198_v8, %v1197_v28 }
 0x30b   : > { %v1002_v52 = vadd.f32 1.0, %v1839_v33  ;;  %v1196_v18 = vld [vmem:[#allocation11 + $0x68] sm:$0xff] (%p663_p12) }
 0x30c   : > { %1844 = vrcp.f32 %v996_v23  ;;  %v1841_v58 = vpop.eup %1840  ;;  %v3654_v23 = vld [vmem:[#allocation209_spill] sm:$0xff] (%p663_p12) }
 0x30d   : > { %1846 = vrcp.f32 %v1002_v52  ;;  %v1843_v25 = vpop.eup %1842  ;;  %v1009_v62 = vadd.f32 1.0, %v1841_v58 }
 0x30f   : > { %1848 = vrcp.f32 %v1009_v62 }
 0x316   : > { %v1845_v59 = vpop.eup %1844 }
 0x317   : > { %v1847_v55 = vpop.eup %1846  ;;  %v1013_v29 = vmul.f32 %v1845_v59, %v1843_v25  ;;  %v3655_v59 = vld [vmem:[#allocation210_spill] sm:$0xff] (%p663_p12) }
 0x318   : > { %v1012_v63 = vmul.f32 %v2038_v14, %v1847_v55 }
 0x319   : > { %v1849_v20 = vpop.eup %1848 }
 0x31a   : > { %v1014_v14 = vadd.f32 %v1013_v29, %v1012_v63   ;;  %v3656_v63 = vld [vmem:[#allocation212_spill] sm:$0xff] (%p663_p12) }
 0x31c   : > { %1850 = vtanh.f32 %v1014_v14  ;;  %v1183_v14 = vld [vmem:[#allocation11] sm:$0xff] (%p663_p12) }
 0x31d   :  { %v1727_v15 = vpack.c.bf16 (%p663_p12), %v1184_v17, %v1183_v14 }
 0x324   :  { %665 = sbr.rel (!%p663_p12) target bundleno = 451 (0x1c3), region = 80 }
 0x326   : > { %v1851_v54 = vpop.eup %1850 }
 0x327   : > { %v3073_v30 = vmul.f32 %v1851_v54, %v1849_v20  }
 0x329   : > { %v3626_v61 = vmov %v3073_v30 }
 0x32a   : > { %v3629_v30 = vmov %v3626_v61  ;;  %1082 = vmatmul.mubr.f32.vlgmr.msra.gmra.mrb[0].mxu0 (%p663_p12), %v3626_v61  ;;  %1153 = vmatmul.mubr.f32.vlgmr.msra.gmra.mrb[0].mxu1 (%p663_p12), %v3626_v61  ;;  %v3657_v61 = vld [vmem:[#allocation211_spill] sm:$0xff] (%p663_p12) }
 0x32b   :  { %1728 = vmatpush3.bf16.msra.mxu0 %v1727_v15  ;;  %v1195_v30 = vld [vmem:[#allocation11 + $0x60] sm:$0xff]  ;;  %1395 = vmatprep.mubr.msk.f32.mxu0 %vm2060_vm1, %v3653_v57 }
 0x32c   :  { %1729 = vmatprep.subr.bf16.mxu0 %v2059_v6  ;;  %v1745_v56 = vpack.c.bf16 %v1196_v18, %v1195_v30 }
 0x32f   :  { %1731 = vmatpush3.bf16.msra.mxu0 %v1730_v10 }
 0x330   :  { %1732 = vmatprep.subr.bf16.mxu0 %v2059_v6 }
 0x333   :  { %1734 = vmatpush3.bf16.msra.mxu0 %v1733_v2 }
 0x334   :  { %1735 = vmatprep.subr.bf16.mxu0 %v2059_v6 }
 0x337   :  { %1737 = vmatpush3.bf16.msra.mxu0 %v1736_v13 }
 0x338   :  { %1738 = vmatprep.subr.bf16.mxu0 %v2059_v6 }
 0x33b   :  { %1740 = vmatpush3.bf16.msra.mxu0 %v1739_v1 }
 0x33c   :  { %1741 = vmatprep.subr.bf16.mxu0 %v2059_v6 }
 0x33f   :  { %1743 = vmatpush3.bf16.msra.mxu0 %v1742_v4 }
 0x340   :  { %1744 = vmatprep.subr.bf16.mxu0 %v2059_v6 }
 0x343   :  { %1746 = vmatpush3.bf16.msra.mxu0 %v1745_v56 }
 0x344   :  { %1747 = vmatprep.subr.bf16.mxu0 %v2059_v6 }
 0x347   :  { %1749 = vmatpush3.bf16.msra.mxu0 %v1748_v53 }
 0x3fd   :  { %v1083_v60 = vpop.f32.mrb[0].mxu0  ;;  %v1154_v33 = vpop.f32.mrb[0].mxu1 }
 0x3fe   :  { %v1084_v52 = vadd.f32 %v1083_v60, %v3654_v23  ;;  %v1085_v58 = vpop.f32.mrb[1].mxu0  ;;  %v1156_v25 = vpop.f32.mrb[1].mxu1  ;;  %v1155_v0 = vadd.f32 %v1154_v33, %v3657_v61 }
 0x3ff   :  { %v1086_v62 = vadd.f32 %v1085_v58, %v3655_v59  ;;  %v1157_v20 = vadd.f32 %v1156_v25, %v3656_v63 }
 0x400   :  { %v1341_v55 = vmul.f32 -1.442695, %v1084_v52 }
 0x401   :  { %v1342_v29 = vmul.f32 -1.442695, %v1086_v62  ;;  %v1343_v54 = vmul.f32 -1.442695, %v1157_v20 }
 0x402   :  { %1852 = vpow2.f32 %v1341_v55 }
 0x403   :  { %1854 = vpow2.f32 %v1342_v29 }
 0x404   :  { %1856 = vpow2.f32 %v1343_v54 }
 0x405   :  { %1858 = vtanh.f32 %v1155_v0 }
 0x40c   :  { %v1853_v19 = vpop.eup %1852 }
 0x40d   :  { %v1855_v26 = vpop.eup %1854  ;;  %v1162_v27 = vadd.f32 1.0, %v1853_v19 }
 0x40e   :  { %v1168_v31 = vadd.f32 1.0, %v1855_v26  ;;  %v1857_v34 = vpop.eup %1856 }
 0x40f   :  { %1860 = vrcp.f32 %v1162_v27  ;;  %v1859_v35 = vpop.eup %1858  ;;  %v1175_v37 = vadd.f32 1.0, %v1857_v34 }
 0x410   :  { %1862 = vrcp.f32 %v1168_v31 }
 0x411   :  { %1864 = vrcp.f32 %v1175_v37 }
 0x419   :  { %v1861_v36 = vpop.eup %1860 }
 0x41a   :  { %v1863_v38 = vpop.eup %1862  ;;  %v1179_v39 = vmul.f32 %v1861_v36, %v1859_v35 }
 0x41b   :  { %v1178_v40 = vmul.f32 %v1863_v38, %v3625_v32  ;;  %v1865_v42 = vpop.eup %1864 }
 0x41d   :  { %v1180_v41 = vadd.f32 %v1179_v39, %v1178_v40 }
 0x41f   :  { %1866 = vtanh.f32 %v1180_v41 }
 0x429   :  { %v1867_v43 = vpop.eup %1866 }
 0x42a   :  { %v1182_v44 = vmul.f32 %v1867_v43, %v1865_v42 }
 0x42c   :  { %1396 = vmatmul.mubr.f32.vlgmr.msra.gmra.mrb[2].mxu0 %v1182_v44 }
 0x4ff   :  { %v1272_v46 = vpop.f32.mrb[2].mxu0 }
 0x500   :  { %v1273_v47 = vadd.f32 %v1344_v45, %v1272_v46  ;;  %v1397_v48 = vpop.f32.mrb[3].mxu0 }
 0x502   :  { %1276 = vst [vmem:[#allocation12] sm:$0xff] %v1273_v47 }
 0x503   :  { %1989 = shalt.err (!%p1986_p3)
}
 0x504   :  { %s1990_s0 = scalar_lea.hbm %s3183_s8, 128 }
 0x505   :  { %p1991_p4 = scmp.ne.s32.totalorder %s3183_s8, %s1990_s0  ;;  %p1994_p5 = scmp.lt.u32.totalorder %s1990_s0, %s3183_s8 }
 0x507   :  { %p1996_p6 = pnand %p1994_p5, %p1991_p4 }
 0x509   :  { %1999 = shalt.err (!%p1996_p6)
}
 0x50a   :  { %1286 = dma.vmem_to_hbm [thread:$0]  %s1284_s28, 128, %s3183_s8, [#allocation5]  }
 0x50b   :  { %2026 = dma.done.wait [#allocation5], 128  }
 0x50c   :  { %2027 = vsyncadd [#allocation5], 4294967168 }
 0x50d   :  { %1290 = vsyncpa [#allocation4], 1 }
 0x50e   :  { %1291 = vsyncpa [#allocation7], 1 }
 0x50f   :  { %1292 = vsyncpa [#allocation10], 1 }
 0x510   :  { %1293 = vsyncpa [#allocation5], 1 }

</bundles_post_ra>
